<compile_context>
chip_gen: v7x
topology: tpu7x:2x2x1
jax: 0.10.0
libtpu: 0.0.40
codegen_flags: <defaults>
</compile_context>

<pallas_src>
import functools

import jax
import jax.numpy as jnp
from jax.experimental import pallas as pl
from jax.experimental.pallas import tpu as pltpu


# ----------------------------- in-kernel helpers ----------------------------


def _mm(x, w):
    return jnp.dot(x, w, preferred_element_type=jnp.float32)


def _layernorm(x, gamma, beta, eps=1e-5):
    mean = jnp.mean(x, axis=-1, keepdims=True)
    cen = x - mean
    var = jnp.mean(cen * cen, axis=-1, keepdims=True)
    return cen * jax.lax.rsqrt(var + eps) * gamma + beta


def _batchnorm(x, gamma, beta, eps=1e-5):
    # BatchNorm1d, training-mode forward: per-feature batch stats, biased variance.
    mean = jnp.mean(x, axis=0, keepdims=True)
    cen = x - mean
    var = jnp.mean(cen * cen, axis=0, keepdims=True)
    return cen * jax.lax.rsqrt(var + eps) * gamma + beta


def _leaky_relu(x, slope=0.2):
    return jnp.where(x > 0, x, slope * x)


# ------------------------------- fused kernel -------------------------------


def _fused_forward_kernel(num_layers, *refs):
    """Entire DeepAutoencoder forward; all refs are whole-array VMEM blocks."""
    decoded_ref, latent_ref = refs[-2], refs[-1]
    it = iter(refs[:-2])

    def nxt():
        return next(it)[...]

    # ---- encoder: embedding + post-norm encoder layers + final LayerNorm ----
    x = nxt()                                  # flattened input (N, input_dim)
    x = _mm(x, nxt()) + nxt()                  # nn.Linear embedding

    for _ in range(num_layers):                # unrolled at trace time
        (wv, bv, wo, bo, w1, b1, w2, b2,
         ln1_g, ln1_b, ln2_g, ln2_b) = [nxt() for _ in range(12)]
        # self-attention over a length-1 sequence == out_proj(v_proj(x))   (exact)
        attn = _mm(_mm(x, wv) + bv, wo) + bo
        x = _layernorm(x + attn, ln1_g, ln1_b)             # norm1(x + attn)
        h = jnp.maximum(_mm(x, w1) + b1, 0.0)              # relu(linear1(x))
        h = _mm(h, w2) + b2                                # linear2(...)
        x = _layernorm(x + h, ln2_g, ln2_b)                # norm2(x + ff)

    norm_g = nxt()
    norm_b = nxt()
    latent = _layernorm(x, norm_g, norm_b)                 # final nn.LayerNorm (no residual)
    latent_ref[...] = latent

    # ---- decoder: (BN -> Linear -> LeakyReLU) x2 -> Linear -> Sigmoid ----
    (bn1_g, bn1_b, dw1, db1,
     bn2_g, bn2_b, dw2, db2,
     dw3, db3) = [nxt() for _ in range(10)]
    h = _leaky_relu(_mm(_batchnorm(latent, bn1_g, bn1_b), dw1) + db1)
    h = _leaky_relu(_mm(_batchnorm(h, bn2_g, bn2_b), dw2) + db2)
    h = _mm(h, dw3) + db3
    decoded_ref[...] = 1.0 / (1.0 + jnp.exp(-h))           # sigmoid


# --------------------------- parameter initialization -----------------------


def init_params(key, input_dim, d_model, nhead, num_layers, dim_feedforward,
                dec_hidden1, dec_hidden2):
    del nhead  # seq-len-1 attention: the head split has no numerical effect
    keys = jax.random.split(key, 3 + num_layers)

    def nrm(k, shape, scale=0.05):
        return scale * jax.random.normal(k, shape, jnp.float32)

    # TODO(synk): does not replicate PyTorch's default weight initializers; only the
    # forward-pass math matches the module.
    params = {
        "emb_w": nrm(keys[0], (input_dim, d_model)),
        "emb_b": nrm(keys[1], (1, d_model)),
        "norm_g": jnp.ones((1, d_model), jnp.float32),
        "norm_b": jnp.zeros((1, d_model), jnp.float32),
        "layers": [],
    }
    for l in range(num_layers):
        lk = jax.random.split(keys[3 + l], 8)
        # nn.MultiheadAttention in_proj is (3*d_model, d_model); only the V block is live.
        in_proj_w = nrm(lk[0], (3 * d_model, d_model))
        in_proj_b = nrm(lk[1], (3 * d_model,))
        params["layers"].append({
            "wv": jnp.transpose(in_proj_w[2 * d_model:]),                 # (E, E)
            "bv": in_proj_b[2 * d_model:].reshape(1, d_model),
            "wo": jnp.transpose(nrm(lk[2], (d_model, d_model))),          # out_proj
            "bo": nrm(lk[3], (1, d_model)),
            "w1": jnp.transpose(nrm(lk[4], (dim_feedforward, d_model))),  # linear1
            "b1": nrm(lk[5], (1, dim_feedforward)),
            "w2": jnp.transpose(nrm(lk[6], (d_model, dim_feedforward))),  # linear2
            "b2": nrm(lk[7], (1, d_model)),
            "ln1_g": jnp.ones((1, d_model), jnp.float32),
            "ln1_b": jnp.zeros((1, d_model), jnp.float32),
            "ln2_g": jnp.ones((1, d_model), jnp.float32),
            "ln2_b": jnp.zeros((1, d_model), jnp.float32),
        })
    dk = jax.random.split(keys[2], 6)
    params["decoder"] = {
        "bn1_g": jnp.ones((1, d_model), jnp.float32),
        "bn1_b": jnp.zeros((1, d_model), jnp.float32),
        "w1": jnp.transpose(nrm(dk[0], (dec_hidden1, d_model))),
        "b1": nrm(dk[1], (1, dec_hidden1)),
        "bn2_g": jnp.ones((1, dec_hidden1), jnp.float32),
        "bn2_b": jnp.zeros((1, dec_hidden1), jnp.float32),
        "w2": jnp.transpose(nrm(dk[2], (dec_hidden2, dec_hidden1))),
        "b2": nrm(dk[3], (1, dec_hidden2)),
        "w3": jnp.transpose(nrm(dk[4], (input_dim, dec_hidden2))),
        "b3": nrm(dk[5], (1, input_dim)),
    }
    return params


def _flatten_params(params):
    flat = [params["emb_w"], params["emb_b"]]
    for lyr in params["layers"]:
        flat += [lyr["wv"], lyr["bv"], lyr["wo"], lyr["bo"],
                 lyr["w1"], lyr["b1"], lyr["w2"], lyr["b2"],
                 lyr["ln1_g"], lyr["ln1_b"], lyr["ln2_g"], lyr["ln2_b"]]
    flat += [params["norm_g"], params["norm_b"]]
    dec = params["decoder"]
    flat += [dec["bn1_g"], dec["bn1_b"], dec["w1"], dec["b1"],
             dec["bn2_g"], dec["bn2_b"], dec["w2"], dec["b2"],
             dec["w3"], dec["b3"]]
    return flat


# ------------------------------- forward pass -------------------------------


def deep_autoencoder_forward(x, params):
    x2 = x.reshape((x.shape[0], -1)).astype(jnp.float32)   # x.view(x.size(0), -1)
    n, input_dim = x2.shape
    d_model = params["emb_w"].shape[1]
    num_layers = len(params["layers"])
    flat = _flatten_params(params)

    vmem = pl.BlockSpec(memory_space=pltpu.MemorySpace.VMEM)
    decoded, latent = pl.pallas_call(
        functools.partial(_fused_forward_kernel, num_layers),
        out_shape=(jax.ShapeDtypeStruct((n, input_dim), jnp.float32),
                   jax.ShapeDtypeStruct((n, d_model), jnp.float32)),
        in_specs=[vmem] * (1 + len(flat)),
        out_specs=(vmem, vmem),
    )(x2, *flat)
    return decoded, latent


if __name__ == "__main__":
    # Small, lane-dense (multiple-of-128 feature dims) demo shapes.
    N = 8                    # batch rows
    input_dim = 128          # flattened per-row features (8 * 16)
    d_model = 128
    nhead = 4
    num_layers = 2
    dim_feedforward = 256
    dec_hidden1 = 128        # scaled-down stand-in for the module's hard-coded 1024
    dec_hidden2 = 256        # scaled-down stand-in for the module's hard-coded 10000

    key = jax.random.PRNGKey(0)
    kp, kx = jax.random.split(key)
    params = init_params(kp, input_dim, d_model, nhead, num_layers,
                         dim_feedforward, dec_hidden1, dec_hidden2)
    x = jax.random.normal(kx, (N, 8, 16), jnp.float32)   # flattened to (N, 128) in forward

    fwd = jax.jit(lambda xx: deep_autoencoder_forward(xx, params))
    decoded, latent = fwd(x)
    jax.block_until_ready((decoded, latent))

    assert decoded.shape == (N, input_dim), decoded.shape
    assert latent.shape == (N, d_model), latent.shape
    assert bool(jnp.all(jnp.isfinite(decoded))) and bool(jnp.all(jnp.isfinite(latent)))
    assert bool(jnp.all((decoded > 0.0) & (decoded < 1.0)))   # sigmoid output range
    print("KERNEL_OK")
</pallas_src>

<mosaic_0001>
module attributes {stable_mosaic.version = 11 : i64} {
  func.func @_fused_forward_kernel(%arg0: memref<8x128xf32, #tpu.memory_space<vmem>>, %arg1: memref<128x128xf32, #tpu.memory_space<vmem>>, %arg2: memref<1x128xf32, #tpu.memory_space<vmem>>, %arg3: memref<128x128xf32, #tpu.memory_space<vmem>>, %arg4: memref<1x128xf32, #tpu.memory_space<vmem>>, %arg5: memref<128x128xf32, #tpu.memory_space<vmem>>, %arg6: memref<1x128xf32, #tpu.memory_space<vmem>>, %arg7: memref<128x256xf32, #tpu.memory_space<vmem>>, %arg8: memref<1x256xf32, #tpu.memory_space<vmem>>, %arg9: memref<256x128xf32, #tpu.memory_space<vmem>>, %arg10: memref<1x128xf32, #tpu.memory_space<vmem>>, %arg11: memref<1x128xf32, #tpu.memory_space<vmem>>, %arg12: memref<1x128xf32, #tpu.memory_space<vmem>>, %arg13: memref<1x128xf32, #tpu.memory_space<vmem>>, %arg14: memref<1x128xf32, #tpu.memory_space<vmem>>, %arg15: memref<128x128xf32, #tpu.memory_space<vmem>>, %arg16: memref<1x128xf32, #tpu.memory_space<vmem>>, %arg17: memref<128x128xf32, #tpu.memory_space<vmem>>, %arg18: memref<1x128xf32, #tpu.memory_space<vmem>>, %arg19: memref<128x256xf32, #tpu.memory_space<vmem>>, %arg20: memref<1x256xf32, #tpu.memory_space<vmem>>, %arg21: memref<256x128xf32, #tpu.memory_space<vmem>>, %arg22: memref<1x128xf32, #tpu.memory_space<vmem>>, %arg23: memref<1x128xf32, #tpu.memory_space<vmem>>, %arg24: memref<1x128xf32, #tpu.memory_space<vmem>>, %arg25: memref<1x128xf32, #tpu.memory_space<vmem>>, %arg26: memref<1x128xf32, #tpu.memory_space<vmem>>, %arg27: memref<1x128xf32, #tpu.memory_space<vmem>>, %arg28: memref<1x128xf32, #tpu.memory_space<vmem>>, %arg29: memref<1x128xf32, #tpu.memory_space<vmem>>, %arg30: memref<1x128xf32, #tpu.memory_space<vmem>>, %arg31: memref<128x128xf32, #tpu.memory_space<vmem>>, %arg32: memref<1x128xf32, #tpu.memory_space<vmem>>, %arg33: memref<1x128xf32, #tpu.memory_space<vmem>>, %arg34: memref<1x128xf32, #tpu.memory_space<vmem>>, %arg35: memref<128x256xf32, #tpu.memory_space<vmem>>, %arg36: memref<1x256xf32, #tpu.memory_space<vmem>>, %arg37: memref<256x128xf32, #tpu.memory_space<vmem>>, %arg38: memref<1x128xf32, #tpu.memory_space<vmem>>, %arg39: memref<8x128xf32, #tpu.memory_space<vmem>>, %arg40: memref<8x128xf32, #tpu.memory_space<vmem>>) attributes {dimension_semantics = [], scalar_prefetch = 0 : i64, scratch_operands = 0 : i64, tpu.core_type = #tpu.core_type<tc>} {
    %c0 = arith.constant 0 : index
    %c0_0 = arith.constant 0 : index
    %0 = vector.load %arg0[%c0, %c0_0] : memref<8x128xf32, #tpu.memory_space<vmem>>, vector<8x128xf32>
    %c0_1 = arith.constant 0 : index
    %c0_2 = arith.constant 0 : index
    %1 = vector.load %arg1[%c0_1, %c0_2] : memref<128x128xf32, #tpu.memory_space<vmem>>, vector<128x128xf32>
    %cst = arith.constant dense<0.000000e+00> : vector<8x128xf32>
    %2 = tpu.matmul %0, %1, %cst {dimension_numbers = #tpu.dot_dimension_numbers<[1], [0], [0], [1], [0, 0, 1, 1], [], []>} : vector<8x128xf32>, vector<128x128xf32>, vector<8x128xf32> -> vector<8x128xf32>
    %c0_3 = arith.constant 0 : index
    %c0_4 = arith.constant 0 : index
    %3 = vector.load %arg2[%c0_3, %c0_4] : memref<1x128xf32, #tpu.memory_space<vmem>>, vector<1x128xf32>
    %4 = vector.broadcast %3 : vector<1x128xf32> to vector<8x128xf32>
    %5 = arith.addf %2, %4 : vector<8x128xf32>
    %c0_5 = arith.constant 0 : index
    %c0_6 = arith.constant 0 : index
    %6 = vector.load %arg3[%c0_5, %c0_6] : memref<128x128xf32, #tpu.memory_space<vmem>>, vector<128x128xf32>
    %c0_7 = arith.constant 0 : index
    %c0_8 = arith.constant 0 : index
    %7 = vector.load %arg4[%c0_7, %c0_8] : memref<1x128xf32, #tpu.memory_space<vmem>>, vector<1x128xf32>
    %c0_9 = arith.constant 0 : index
    %c0_10 = arith.constant 0 : index
    %8 = vector.load %arg5[%c0_9, %c0_10] : memref<128x128xf32, #tpu.memory_space<vmem>>, vector<128x128xf32>
    %c0_11 = arith.constant 0 : index
    %c0_12 = arith.constant 0 : index
    %9 = vector.load %arg6[%c0_11, %c0_12] : memref<1x128xf32, #tpu.memory_space<vmem>>, vector<1x128xf32>
    %c0_13 = arith.constant 0 : index
    %c0_14 = arith.constant 0 : index
    %10 = vector.load %arg7[%c0_13, %c0_14] : memref<128x256xf32, #tpu.memory_space<vmem>>, vector<128x256xf32>
    %c0_15 = arith.constant 0 : index
    %c0_16 = arith.constant 0 : index
    %11 = vector.load %arg8[%c0_15, %c0_16] : memref<1x256xf32, #tpu.memory_space<vmem>>, vector<1x256xf32>
    %c0_17 = arith.constant 0 : index
    %c0_18 = arith.constant 0 : index
    %12 = vector.load %arg9[%c0_17, %c0_18] : memref<256x128xf32, #tpu.memory_space<vmem>>, vector<256x128xf32>
    %c0_19 = arith.constant 0 : index
    %c0_20 = arith.constant 0 : index
    %13 = vector.load %arg10[%c0_19, %c0_20] : memref<1x128xf32, #tpu.memory_space<vmem>>, vector<1x128xf32>
    %c0_21 = arith.constant 0 : index
    %c0_22 = arith.constant 0 : index
    %14 = vector.load %arg11[%c0_21, %c0_22] : memref<1x128xf32, #tpu.memory_space<vmem>>, vector<1x128xf32>
    %c0_23 = arith.constant 0 : index
    %c0_24 = arith.constant 0 : index
    %15 = vector.load %arg12[%c0_23, %c0_24] : memref<1x128xf32, #tpu.memory_space<vmem>>, vector<1x128xf32>
    %c0_25 = arith.constant 0 : index
    %c0_26 = arith.constant 0 : index
    %16 = vector.load %arg13[%c0_25, %c0_26] : memref<1x128xf32, #tpu.memory_space<vmem>>, vector<1x128xf32>
    %c0_27 = arith.constant 0 : index
    %c0_28 = arith.constant 0 : index
    %17 = vector.load %arg14[%c0_27, %c0_28] : memref<1x128xf32, #tpu.memory_space<vmem>>, vector<1x128xf32>
    %cst_29 = arith.constant dense<0.000000e+00> : vector<8x128xf32>
    %18 = tpu.matmul %5, %6, %cst_29 {dimension_numbers = #tpu.dot_dimension_numbers<[1], [0], [0], [1], [0, 0, 1, 1], [], []>} : vector<8x128xf32>, vector<128x128xf32>, vector<8x128xf32> -> vector<8x128xf32>
    %19 = vector.broadcast %7 : vector<1x128xf32> to vector<8x128xf32>
    %20 = arith.addf %18, %19 : vector<8x128xf32>
    %cst_30 = arith.constant dense<0.000000e+00> : vector<8x128xf32>
    %21 = tpu.matmul %20, %8, %cst_30 {dimension_numbers = #tpu.dot_dimension_numbers<[1], [0], [0], [1], [0, 0, 1, 1], [], []>} : vector<8x128xf32>, vector<128x128xf32>, vector<8x128xf32> -> vector<8x128xf32>
    %22 = vector.broadcast %9 : vector<1x128xf32> to vector<8x128xf32>
    %23 = arith.addf %21, %22 : vector<8x128xf32>
    %24 = arith.addf %5, %23 : vector<8x128xf32>
    %cst_31 = arith.constant dense<0.000000e+00> : vector<8xf32>
    %25 = vector.multi_reduction <add>, %24, %cst_31 [1] : vector<8x128xf32> to vector<8xf32>
    %26 = vector.shape_cast %25 : vector<8xf32> to vector<8x1xf32>
    %cst_32 = arith.constant 1.280000e+02 : f32
    %27 = vector.broadcast %cst_32 : f32 to vector<8x1xf32>
    %28 = arith.divf %26, %27 : vector<8x1xf32>
    %29 = vector.broadcast %28 : vector<8x1xf32> to vector<8x128xf32>
    %30 = arith.subf %24, %29 : vector<8x128xf32>
    %31 = arith.mulf %30, %30 : vector<8x128xf32>
    %cst_33 = arith.constant dense<0.000000e+00> : vector<8xf32>
    %32 = vector.multi_reduction <add>, %31, %cst_33 [1] : vector<8x128xf32> to vector<8xf32>
    %33 = vector.shape_cast %32 : vector<8xf32> to vector<8x1xf32>
    %cst_34 = arith.constant 1.280000e+02 : f32
    %34 = vector.broadcast %cst_34 : f32 to vector<8x1xf32>
    %35 = arith.divf %33, %34 : vector<8x1xf32>
    %cst_35 = arith.constant 9.99999974E-6 : f32
    %36 = vector.broadcast %cst_35 : f32 to vector<8x1xf32>
    %37 = arith.addf %35, %36 : vector<8x1xf32>
    %38 = math.rsqrt %37 : vector<8x1xf32>
    %39 = vector.broadcast %38 : vector<8x1xf32> to vector<8x128xf32>
    %40 = arith.mulf %30, %39 : vector<8x128xf32>
    %41 = vector.broadcast %14 : vector<1x128xf32> to vector<8x128xf32>
    %42 = arith.mulf %40, %41 : vector<8x128xf32>
    %43 = vector.broadcast %15 : vector<1x128xf32> to vector<8x128xf32>
    %44 = arith.addf %42, %43 : vector<8x128xf32>
    %cst_36 = arith.constant dense<0.000000e+00> : vector<8x256xf32>
    %45 = tpu.matmul %44, %10, %cst_36 {dimension_numbers = #tpu.dot_dimension_numbers<[1], [0], [0], [1], [0, 0, 1, 1], [], []>} : vector<8x128xf32>, vector<128x256xf32>, vector<8x256xf32> -> vector<8x256xf32>
    %46 = vector.broadcast %11 : vector<1x256xf32> to vector<8x256xf32>
    %47 = arith.addf %45, %46 : vector<8x256xf32>
    %cst_37 = arith.constant 0.000000e+00 : f32
    %48 = vector.broadcast %cst_37 : f32 to vector<8x256xf32>
    %49 = arith.maximumf %47, %48 : vector<8x256xf32>
    %cst_38 = arith.constant dense<0.000000e+00> : vector<8x128xf32>
    %50 = tpu.matmul %49, %12, %cst_38 {dimension_numbers = #tpu.dot_dimension_numbers<[1], [0], [0], [1], [0, 0, 1, 1], [], []>} : vector<8x256xf32>, vector<256x128xf32>, vector<8x128xf32> -> vector<8x128xf32>
    %51 = vector.broadcast %13 : vector<1x128xf32> to vector<8x128xf32>
    %52 = arith.addf %50, %51 : vector<8x128xf32>
    %53 = arith.addf %44, %52 : vector<8x128xf32>
    %cst_39 = arith.constant dense<0.000000e+00> : vector<8xf32>
    %54 = vector.multi_reduction <add>, %53, %cst_39 [1] : vector<8x128xf32> to vector<8xf32>
    %55 = vector.shape_cast %54 : vector<8xf32> to vector<8x1xf32>
    %cst_40 = arith.constant 1.280000e+02 : f32
    %56 = vector.broadcast %cst_40 : f32 to vector<8x1xf32>
    %57 = arith.divf %55, %56 : vector<8x1xf32>
    %58 = vector.broadcast %57 : vector<8x1xf32> to vector<8x128xf32>
    %59 = arith.subf %53, %58 : vector<8x128xf32>
    %60 = arith.mulf %59, %59 : vector<8x128xf32>
    %cst_41 = arith.constant dense<0.000000e+00> : vector<8xf32>
    %61 = vector.multi_reduction <add>, %60, %cst_41 [1] : vector<8x128xf32> to vector<8xf32>
    %62 = vector.shape_cast %61 : vector<8xf32> to vector<8x1xf32>
    %cst_42 = arith.constant 1.280000e+02 : f32
    %63 = vector.broadcast %cst_42 : f32 to vector<8x1xf32>
    %64 = arith.divf %62, %63 : vector<8x1xf32>
    %cst_43 = arith.constant 9.99999974E-6 : f32
    %65 = vector.broadcast %cst_43 : f32 to vector<8x1xf32>
    %66 = arith.addf %64, %65 : vector<8x1xf32>
    %67 = math.rsqrt %66 : vector<8x1xf32>
    %68 = vector.broadcast %67 : vector<8x1xf32> to vector<8x128xf32>
    %69 = arith.mulf %59, %68 : vector<8x128xf32>
    %70 = vector.broadcast %16 : vector<1x128xf32> to vector<8x128xf32>
    %71 = arith.mulf %69, %70 : vector<8x128xf32>
    %72 = vector.broadcast %17 : vector<1x128xf32> to vector<8x128xf32>
    %73 = arith.addf %71, %72 : vector<8x128xf32>
    %c0_44 = arith.constant 0 : index
    %c0_45 = arith.constant 0 : index
    %74 = vector.load %arg15[%c0_44, %c0_45] : memref<128x128xf32, #tpu.memory_space<vmem>>, vector<128x128xf32>
    %c0_46 = arith.constant 0 : index
    %c0_47 = arith.constant 0 : index
    %75 = vector.load %arg16[%c0_46, %c0_47] : memref<1x128xf32, #tpu.memory_space<vmem>>, vector<1x128xf32>
    %c0_48 = arith.constant 0 : index
    %c0_49 = arith.constant 0 : index
    %76 = vector.load %arg17[%c0_48, %c0_49] : memref<128x128xf32, #tpu.memory_space<vmem>>, vector<128x128xf32>
    %c0_50 = arith.constant 0 : index
    %c0_51 = arith.constant 0 : index
    %77 = vector.load %arg18[%c0_50, %c0_51] : memref<1x128xf32, #tpu.memory_space<vmem>>, vector<1x128xf32>
    %c0_52 = arith.constant 0 : index
    %c0_53 = arith.constant 0 : index
    %78 = vector.load %arg19[%c0_52, %c0_53] : memref<128x256xf32, #tpu.memory_space<vmem>>, vector<128x256xf32>
    %c0_54 = arith.constant 0 : index
    %c0_55 = arith.constant 0 : index
    %79 = vector.load %arg20[%c0_54, %c0_55] : memref<1x256xf32, #tpu.memory_space<vmem>>, vector<1x256xf32>
    %c0_56 = arith.constant 0 : index
    %c0_57 = arith.constant 0 : index
    %80 = vector.load %arg21[%c0_56, %c0_57] : memref<256x128xf32, #tpu.memory_space<vmem>>, vector<256x128xf32>
    %c0_58 = arith.constant 0 : index
    %c0_59 = arith.constant 0 : index
    %81 = vector.load %arg22[%c0_58, %c0_59] : memref<1x128xf32, #tpu.memory_space<vmem>>, vector<1x128xf32>
    %c0_60 = arith.constant 0 : index
    %c0_61 = arith.constant 0 : index
    %82 = vector.load %arg23[%c0_60, %c0_61] : memref<1x128xf32, #tpu.memory_space<vmem>>, vector<1x128xf32>
    %c0_62 = arith.constant 0 : index
    %c0_63 = arith.constant 0 : index
    %83 = vector.load %arg24[%c0_62, %c0_63] : memref<1x128xf32, #tpu.memory_space<vmem>>, vector<1x128xf32>
    %c0_64 = arith.constant 0 : index
    %c0_65 = arith.constant 0 : index
    %84 = vector.load %arg25[%c0_64, %c0_65] : memref<1x128xf32, #tpu.memory_space<vmem>>, vector<1x128xf32>
    %c0_66 = arith.constant 0 : index
    %c0_67 = arith.constant 0 : index
    %85 = vector.load %arg26[%c0_66, %c0_67] : memref<1x128xf32, #tpu.memory_space<vmem>>, vector<1x128xf32>
    %cst_68 = arith.constant dense<0.000000e+00> : vector<8x128xf32>
    %86 = tpu.matmul %73, %74, %cst_68 {dimension_numbers = #tpu.dot_dimension_numbers<[1], [0], [0], [1], [0, 0, 1, 1], [], []>} : vector<8x128xf32>, vector<128x128xf32>, vector<8x128xf32> -> vector<8x128xf32>
    %87 = vector.broadcast %75 : vector<1x128xf32> to vector<8x128xf32>
    %88 = arith.addf %86, %87 : vector<8x128xf32>
    %cst_69 = arith.constant dense<0.000000e+00> : vector<8x128xf32>
    %89 = tpu.matmul %88, %76, %cst_69 {dimension_numbers = #tpu.dot_dimension_numbers<[1], [0], [0], [1], [0, 0, 1, 1], [], []>} : vector<8x128xf32>, vector<128x128xf32>, vector<8x128xf32> -> vector<8x128xf32>
    %90 = vector.broadcast %77 : vector<1x128xf32> to vector<8x128xf32>
    %91 = arith.addf %89, %90 : vector<8x128xf32>
    %92 = arith.addf %73, %91 : vector<8x128xf32>
    %cst_70 = arith.constant dense<0.000000e+00> : vector<8xf32>
    %93 = vector.multi_reduction <add>, %92, %cst_70 [1] : vector<8x128xf32> to vector<8xf32>
    %94 = vector.shape_cast %93 : vector<8xf32> to vector<8x1xf32>
    %cst_71 = arith.constant 1.280000e+02 : f32
    %95 = vector.broadcast %cst_71 : f32 to vector<8x1xf32>
    %96 = arith.divf %94, %95 : vector<8x1xf32>
    %97 = vector.broadcast %96 : vector<8x1xf32> to vector<8x128xf32>
    %98 = arith.subf %92, %97 : vector<8x128xf32>
    %99 = arith.mulf %98, %98 : vector<8x128xf32>
    %cst_72 = arith.constant dense<0.000000e+00> : vector<8xf32>
    %100 = vector.multi_reduction <add>, %99, %cst_72 [1] : vector<8x128xf32> to vector<8xf32>
    %101 = vector.shape_cast %100 : vector<8xf32> to vector<8x1xf32>
    %cst_73 = arith.constant 1.280000e+02 : f32
    %102 = vector.broadcast %cst_73 : f32 to vector<8x1xf32>
    %103 = arith.divf %101, %102 : vector<8x1xf32>
    %cst_74 = arith.constant 9.99999974E-6 : f32
    %104 = vector.broadcast %cst_74 : f32 to vector<8x1xf32>
    %105 = arith.addf %103, %104 : vector<8x1xf32>
    %106 = math.rsqrt %105 : vector<8x1xf32>
    %107 = vector.broadcast %106 : vector<8x1xf32> to vector<8x128xf32>
    %108 = arith.mulf %98, %107 : vector<8x128xf32>
    %109 = vector.broadcast %82 : vector<1x128xf32> to vector<8x128xf32>
    %110 = arith.mulf %108, %109 : vector<8x128xf32>
    %111 = vector.broadcast %83 : vector<1x128xf32> to vector<8x128xf32>
    %112 = arith.addf %110, %111 : vector<8x128xf32>
    %cst_75 = arith.constant dense<0.000000e+00> : vector<8x256xf32>
    %113 = tpu.matmul %112, %78, %cst_75 {dimension_numbers = #tpu.dot_dimension_numbers<[1], [0], [0], [1], [0, 0, 1, 1], [], []>} : vector<8x128xf32>, vector<128x256xf32>, vector<8x256xf32> -> vector<8x256xf32>
    %114 = vector.broadcast %79 : vector<1x256xf32> to vector<8x256xf32>
    %115 = arith.addf %113, %114 : vector<8x256xf32>
    %cst_76 = arith.constant 0.000000e+00 : f32
    %116 = vector.broadcast %cst_76 : f32 to vector<8x256xf32>
    %117 = arith.maximumf %115, %116 : vector<8x256xf32>
    %cst_77 = arith.constant dense<0.000000e+00> : vector<8x128xf32>
    %118 = tpu.matmul %117, %80, %cst_77 {dimension_numbers = #tpu.dot_dimension_numbers<[1], [0], [0], [1], [0, 0, 1, 1], [], []>} : vector<8x256xf32>, vector<256x128xf32>, vector<8x128xf32> -> vector<8x128xf32>
    %119 = vector.broadcast %81 : vector<1x128xf32> to vector<8x128xf32>
    %120 = arith.addf %118, %119 : vector<8x128xf32>
    %121 = arith.addf %112, %120 : vector<8x128xf32>
    %cst_78 = arith.constant dense<0.000000e+00> : vector<8xf32>
    %122 = vector.multi_reduction <add>, %121, %cst_78 [1] : vector<8x128xf32> to vector<8xf32>
    %123 = vector.shape_cast %122 : vector<8xf32> to vector<8x1xf32>
    %cst_79 = arith.constant 1.280000e+02 : f32
    %124 = vector.broadcast %cst_79 : f32 to vector<8x1xf32>
    %125 = arith.divf %123, %124 : vector<8x1xf32>
    %126 = vector.broadcast %125 : vector<8x1xf32> to vector<8x128xf32>
    %127 = arith.subf %121, %126 : vector<8x128xf32>
    %128 = arith.mulf %127, %127 : vector<8x128xf32>
    %cst_80 = arith.constant dense<0.000000e+00> : vector<8xf32>
    %129 = vector.multi_reduction <add>, %128, %cst_80 [1] : vector<8x128xf32> to vector<8xf32>
    %130 = vector.shape_cast %129 : vector<8xf32> to vector<8x1xf32>
    %cst_81 = arith.constant 1.280000e+02 : f32
    %131 = vector.broadcast %cst_81 : f32 to vector<8x1xf32>
    %132 = arith.divf %130, %131 : vector<8x1xf32>
    %cst_82 = arith.constant 9.99999974E-6 : f32
    %133 = vector.broadcast %cst_82 : f32 to vector<8x1xf32>
    %134 = arith.addf %132, %133 : vector<8x1xf32>
    %135 = math.rsqrt %134 : vector<8x1xf32>
    %136 = vector.broadcast %135 : vector<8x1xf32> to vector<8x128xf32>
    %137 = arith.mulf %127, %136 : vector<8x128xf32>
    %138 = vector.broadcast %84 : vector<1x128xf32> to vector<8x128xf32>
    %139 = arith.mulf %137, %138 : vector<8x128xf32>
    %140 = vector.broadcast %85 : vector<1x128xf32> to vector<8x128xf32>
    %141 = arith.addf %139, %140 : vector<8x128xf32>
    %c0_83 = arith.constant 0 : index
    %c0_84 = arith.constant 0 : index
    %142 = vector.load %arg27[%c0_83, %c0_84] : memref<1x128xf32, #tpu.memory_space<vmem>>, vector<1x128xf32>
    %c0_85 = arith.constant 0 : index
    %c0_86 = arith.constant 0 : index
    %143 = vector.load %arg28[%c0_85, %c0_86] : memref<1x128xf32, #tpu.memory_space<vmem>>, vector<1x128xf32>
    %cst_87 = arith.constant dense<0.000000e+00> : vector<8xf32>
    %144 = vector.multi_reduction <add>, %141, %cst_87 [1] : vector<8x128xf32> to vector<8xf32>
    %145 = vector.shape_cast %144 : vector<8xf32> to vector<8x1xf32>
    %cst_88 = arith.constant 1.280000e+02 : f32
    %146 = vector.broadcast %cst_88 : f32 to vector<8x1xf32>
    %147 = arith.divf %145, %146 : vector<8x1xf32>
    %148 = vector.broadcast %147 : vector<8x1xf32> to vector<8x128xf32>
    %149 = arith.subf %141, %148 : vector<8x128xf32>
    %150 = arith.mulf %149, %149 : vector<8x128xf32>
    %cst_89 = arith.constant dense<0.000000e+00> : vector<8xf32>
    %151 = vector.multi_reduction <add>, %150, %cst_89 [1] : vector<8x128xf32> to vector<8xf32>
    %152 = vector.shape_cast %151 : vector<8xf32> to vector<8x1xf32>
    %cst_90 = arith.constant 1.280000e+02 : f32
    %153 = vector.broadcast %cst_90 : f32 to vector<8x1xf32>
    %154 = arith.divf %152, %153 : vector<8x1xf32>
    %cst_91 = arith.constant 9.99999974E-6 : f32
    %155 = vector.broadcast %cst_91 : f32 to vector<8x1xf32>
    %156 = arith.addf %154, %155 : vector<8x1xf32>
    %157 = math.rsqrt %156 : vector<8x1xf32>
    %158 = vector.broadcast %157 : vector<8x1xf32> to vector<8x128xf32>
    %159 = arith.mulf %149, %158 : vector<8x128xf32>
    %160 = vector.broadcast %142 : vector<1x128xf32> to vector<8x128xf32>
    %161 = arith.mulf %159, %160 : vector<8x128xf32>
    %162 = vector.broadcast %143 : vector<1x128xf32> to vector<8x128xf32>
    %163 = arith.addf %161, %162 : vector<8x128xf32>
    %c0_92 = arith.constant 0 : index
    %c0_93 = arith.constant 0 : index
    %164 = vector.load %arg40[%c0_92, %c0_93] : memref<8x128xf32, #tpu.memory_space<vmem>>, vector<8x128xf32>
    tpu.vector_store %arg40[%c0_92, %c0_93], %163 {strides = array<i32>} : memref<8x128xf32, #tpu.memory_space<vmem>>, vector<8x128xf32>,
    %c0_94 = arith.constant 0 : index
    %c0_95 = arith.constant 0 : index
    %165 = vector.load %arg29[%c0_94, %c0_95] : memref<1x128xf32, #tpu.memory_space<vmem>>, vector<1x128xf32>
    %c0_96 = arith.constant 0 : index
    %c0_97 = arith.constant 0 : index
    %166 = vector.load %arg30[%c0_96, %c0_97] : memref<1x128xf32, #tpu.memory_space<vmem>>, vector<1x128xf32>
    %c0_98 = arith.constant 0 : index
    %c0_99 = arith.constant 0 : index
    %167 = vector.load %arg31[%c0_98, %c0_99] : memref<128x128xf32, #tpu.memory_space<vmem>>, vector<128x128xf32>
    %c0_100 = arith.constant 0 : index
    %c0_101 = arith.constant 0 : index
    %168 = vector.load %arg32[%c0_100, %c0_101] : memref<1x128xf32, #tpu.memory_space<vmem>>, vector<1x128xf32>
    %c0_102 = arith.constant 0 : index
    %c0_103 = arith.constant 0 : index
    %169 = vector.load %arg33[%c0_102, %c0_103] : memref<1x128xf32, #tpu.memory_space<vmem>>, vector<1x128xf32>
    %c0_104 = arith.constant 0 : index
    %c0_105 = arith.constant 0 : index
    %170 = vector.load %arg34[%c0_104, %c0_105] : memref<1x128xf32, #tpu.memory_space<vmem>>, vector<1x128xf32>
    %c0_106 = arith.constant 0 : index
    %c0_107 = arith.constant 0 : index
    %171 = vector.load %arg35[%c0_106, %c0_107] : memref<128x256xf32, #tpu.memory_space<vmem>>, vector<128x256xf32>
    %c0_108 = arith.constant 0 : index
    %c0_109 = arith.constant 0 : index
    %172 = vector.load %arg36[%c0_108, %c0_109] : memref<1x256xf32, #tpu.memory_space<vmem>>, vector<1x256xf32>
    %c0_110 = arith.constant 0 : index
    %c0_111 = arith.constant 0 : index
    %173 = vector.load %arg37[%c0_110, %c0_111] : memref<256x128xf32, #tpu.memory_space<vmem>>, vector<256x128xf32>
    %c0_112 = arith.constant 0 : index
    %c0_113 = arith.constant 0 : index
    %174 = vector.load %arg38[%c0_112, %c0_113] : memref<1x128xf32, #tpu.memory_space<vmem>>, vector<1x128xf32>
    %cst_114 = arith.constant dense<0.000000e+00> : vector<128xf32>
    %175 = vector.multi_reduction <add>, %163, %cst_114 [0] : vector<8x128xf32> to vector<128xf32>
    %176 = vector.shape_cast %175 : vector<128xf32> to vector<1x128xf32>
    %cst_115 = arith.constant 8.000000e+00 : f32
    %177 = vector.broadcast %cst_115 : f32 to vector<1x128xf32>
    %178 = arith.divf %176, %177 : vector<1x128xf32>
    %179 = vector.broadcast %178 : vector<1x128xf32> to vector<8x128xf32>
    %180 = arith.subf %163, %179 : vector<8x128xf32>
    %181 = arith.mulf %180, %180 : vector<8x128xf32>
    %cst_116 = arith.constant dense<0.000000e+00> : vector<128xf32>
    %182 = vector.multi_reduction <add>, %181, %cst_116 [0] : vector<8x128xf32> to vector<128xf32>
    %183 = vector.shape_cast %182 : vector<128xf32> to vector<1x128xf32>
    %cst_117 = arith.constant 8.000000e+00 : f32
    %184 = vector.broadcast %cst_117 : f32 to vector<1x128xf32>
    %185 = arith.divf %183, %184 : vector<1x128xf32>
    %cst_118 = arith.constant 9.99999974E-6 : f32
    %186 = vector.broadcast %cst_118 : f32 to vector<1x128xf32>
    %187 = arith.addf %185, %186 : vector<1x128xf32>
    %188 = math.rsqrt %187 : vector<1x128xf32>
    %189 = vector.broadcast %188 : vector<1x128xf32> to vector<8x128xf32>
    %190 = arith.mulf %180, %189 : vector<8x128xf32>
    %191 = vector.broadcast %165 : vector<1x128xf32> to vector<8x128xf32>
    %192 = arith.mulf %190, %191 : vector<8x128xf32>
    %193 = vector.broadcast %166 : vector<1x128xf32> to vector<8x128xf32>
    %194 = arith.addf %192, %193 : vector<8x128xf32>
    %cst_119 = arith.constant dense<0.000000e+00> : vector<8x128xf32>
    %195 = tpu.matmul %194, %167, %cst_119 {dimension_numbers = #tpu.dot_dimension_numbers<[1], [0], [0], [1], [0, 0, 1, 1], [], []>} : vector<8x128xf32>, vector<128x128xf32>, vector<8x128xf32> -> vector<8x128xf32>
    %196 = vector.broadcast %168 : vector<1x128xf32> to vector<8x128xf32>
    %197 = arith.addf %195, %196 : vector<8x128xf32>
    %cst_120 = arith.constant 0.000000e+00 : f32
    %198 = vector.broadcast %cst_120 : f32 to vector<8x128xf32>
    %199 = arith.cmpf ogt, %197, %198 : vector<8x128xf32>
    %cst_121 = arith.constant 2.000000e-01 : f32
    %200 = vector.broadcast %cst_121 : f32 to vector<8x128xf32>
    %201 = arith.mulf %200, %197 : vector<8x128xf32>
    %202 = arith.select %199, %197, %201 : vector<8x128xi1>, vector<8x128xf32>
    %cst_122 = arith.constant dense<0.000000e+00> : vector<128xf32>
    %203 = vector.multi_reduction <add>, %202, %cst_122 [0] : vector<8x128xf32> to vector<128xf32>
    %204 = vector.shape_cast %203 : vector<128xf32> to vector<1x128xf32>
    %cst_123 = arith.constant 8.000000e+00 : f32
    %205 = vector.broadcast %cst_123 : f32 to vector<1x128xf32>
    %206 = arith.divf %204, %205 : vector<1x128xf32>
    %207 = vector.broadcast %206 : vector<1x128xf32> to vector<8x128xf32>
    %208 = arith.subf %202, %207 : vector<8x128xf32>
    %209 = arith.mulf %208, %208 : vector<8x128xf32>
    %cst_124 = arith.constant dense<0.000000e+00> : vector<128xf32>
    %210 = vector.multi_reduction <add>, %209, %cst_124 [0] : vector<8x128xf32> to vector<128xf32>
    %211 = vector.shape_cast %210 : vector<128xf32> to vector<1x128xf32>
    %cst_125 = arith.constant 8.000000e+00 : f32
    %212 = vector.broadcast %cst_125 : f32 to vector<1x128xf32>
    %213 = arith.divf %211, %212 : vector<1x128xf32>
    %cst_126 = arith.constant 9.99999974E-6 : f32
    %214 = vector.broadcast %cst_126 : f32 to vector<1x128xf32>
    %215 = arith.addf %213, %214 : vector<1x128xf32>
    %216 = math.rsqrt %215 : vector<1x128xf32>
    %217 = vector.broadcast %216 : vector<1x128xf32> to vector<8x128xf32>
    %218 = arith.mulf %208, %217 : vector<8x128xf32>
    %219 = vector.broadcast %169 : vector<1x128xf32> to vector<8x128xf32>
    %220 = arith.mulf %218, %219 : vector<8x128xf32>
    %221 = vector.broadcast %170 : vector<1x128xf32> to vector<8x128xf32>
    %222 = arith.addf %220, %221 : vector<8x128xf32>
    %cst_127 = arith.constant dense<0.000000e+00> : vector<8x256xf32>
    %223 = tpu.matmul %222, %171, %cst_127 {dimension_numbers = #tpu.dot_dimension_numbers<[1], [0], [0], [1], [0, 0, 1, 1], [], []>} : vector<8x128xf32>, vector<128x256xf32>, vector<8x256xf32> -> vector<8x256xf32>
    %224 = vector.broadcast %172 : vector<1x256xf32> to vector<8x256xf32>
    %225 = arith.addf %223, %224 : vector<8x256xf32>
    %cst_128 = arith.constant 0.000000e+00 : f32
    %226 = vector.broadcast %cst_128 : f32 to vector<8x256xf32>
    %227 = arith.cmpf ogt, %225, %226 : vector<8x256xf32>
    %cst_129 = arith.constant 2.000000e-01 : f32
    %228 = vector.broadcast %cst_129 : f32 to vector<8x256xf32>
    %229 = arith.mulf %228, %225 : vector<8x256xf32>
    %230 = arith.select %227, %225, %229 : vector<8x256xi1>, vector<8x256xf32>
    %cst_130 = arith.constant dense<0.000000e+00> : vector<8x128xf32>
    %231 = tpu.matmul %230, %173, %cst_130 {dimension_numbers = #tpu.dot_dimension_numbers<[1], [0], [0], [1], [0, 0, 1, 1], [], []>} : vector<8x256xf32>, vector<256x128xf32>, vector<8x128xf32> -> vector<8x128xf32>
    %232 = vector.broadcast %174 : vector<1x128xf32> to vector<8x128xf32>
    %233 = arith.addf %231, %232 : vector<8x128xf32>
    %cst_131 = arith.constant 0.000000e+00 : f32
    %234 = vector.broadcast %cst_131 : f32 to vector<8x128xf32>
    %235 = arith.subf %234, %233 : vector<8x128xf32>
    %236 = math.exp %235 : vector<8x128xf32>
    %cst_132 = arith.constant 1.000000e+00 : f32
    %237 = vector.broadcast %cst_132 : f32 to vector<8x128xf32>
    %238 = arith.addf %237, %236 : vector<8x128xf32>
    %cst_133 = arith.constant 1.000000e+00 : f32
    %239 = vector.broadcast %cst_133 : f32 to vector<8x128xf32>
    %240 = arith.divf %239, %238 : vector<8x128xf32>
    %c0_134 = arith.constant 0 : index
    %c0_135 = arith.constant 0 : index
    %241 = vector.load %arg39[%c0_134, %c0_135] : memref<8x128xf32, #tpu.memory_space<vmem>>, vector<8x128xf32>
    tpu.vector_store %arg39[%c0_134, %c0_135], %240 {strides = array<i32>} : memref<8x128xf32, #tpu.memory_space<vmem>>, vector<8x128xf32>,
    return
  }
}

</mosaic_0001>

<bundles_post_ra>
// kernel: _lambda_.1
= control target key start
LH: loop header
LB: loop body
LE: loop exit
PB: predicated region body
PF: predicated region fallthrough
CT: control target
= control target key end

     0   :  { %s3009_s6 = smov 1   ;;  %s3010_s10 = smov 2   ;;  %s3530_s0 = inlined_call_operand.smem [shape: u32[41], index: -1, kind: input, shape index: {}] }
   0x1   :  { %s3077_s5 = sld [smem:[%s3530_s0]]   ;;  %s3011_s14 = smov 3  }
   0x2   :  { %s3082_s9 = sld [smem:[%s3530_s0 + %s3009_s6]]   ;;  %s3012_s18 = smov 4  }
   0x3   :  { %s3087_s13 = sld [smem:[%s3530_s0 + %s3010_s10]]   ;;  %s3013_s22 = smov 5  }
   0x4   :  { %s3092_s17 = sld [smem:[%s3530_s0 + %s3011_s14]]   ;;  %s3014_s26 = smov 6  }
   0x5   :  { %s3097_s21 = sld [smem:[%s3530_s0 + %s3012_s18]]   ;;  %s3015_s30 = smov 7  }
   0x6   :  { %s3102_s25 = sld [smem:[%s3530_s0 + %s3013_s22]]   ;;  %s3016_s4 = smov 8  }
   0x7   :  { %s3107_s29 = sld [smem:[%s3530_s0 + %s3014_s26]]   ;;  %s3017_s10 = smov 9  }
   0x8   :  { %s3112_s3 = sld [smem:[%s3530_s0 + %s3015_s30]]   ;;  %s3018_s15 = smov 10  }
   0x9   :  { %s3117_s8 = sld [smem:[%s3530_s0 + %s3016_s4]]   ;;  %s3019_s20 = smov 11  }
   0xa   :  { %s3122_s14 = sld [smem:[%s3530_s0 + %s3017_s10]]   ;;  %s3020_s26 = smov 12  }
   0xb   :  { %s3127_s19 = sld [smem:[%s3530_s0 + %s3018_s15]]   ;;  %s3021_s1 = smov 13  }
   0xc   :  { %s3132_s24 = sld [smem:[%s3530_s0 + %s3019_s20]]   ;;  %s3022_s7 = smov 14  }
   0xd   :  { %s3137_s30 = sld [smem:[%s3530_s0 + %s3020_s26]]   ;;  %s3023_s15 = smov 15  }
   0xe   :  { %s3142_s6 = sld [smem:[%s3530_s0 + %s3021_s1]]   ;;  %s3024_s22 = smov 16  }
   0xf   :  { %3532 = sst [smem:[#allocation31_spill]] %s3117_s8  ;;  %s3025_s28 = smov 17  }
  0x10   :  { %s3147_s12 = sld [smem:[%s3530_s0 + %s3022_s7]]   ;;  %s3026_s7 = smov 18  }
  0x11   :  { %3533 = sst [smem:[#allocation32_spill]] %s3127_s19 }
  0x12   :  { %3534 = sst [smem:[#allocation33_spill]] %s3132_s24 }
  0x13   :  { %3535 = sst [smem:[#allocation34_spill]] %s3137_s30 }
  0x14   :  { %3536 = sst [smem:[#allocation35_spill]] %s3142_s6 }
  0x15   :  { %s3152_s20 = sld [smem:[%s3530_s0 + %s3023_s15]]   ;;  %s3027_s15 = smov 19  }
  0x16   :  { %3537 = sst [smem:[#allocation36_spill]] %s3147_s12 }
  0x17   :  { %s3157_s27 = sld [smem:[%s3530_s0 + %s3024_s22]]   ;;  %s3028_s22 = smov 20  }
  0x18   :  { %s3162_s4 = sld [smem:[%s3530_s0 + %s3025_s28]]   ;;  %s3029_s28 = smov 21  }
  0x19   :  { %s3167_s12 = sld [smem:[%s3530_s0 + %s3026_s7]]   ;;  %s3030_s7 = smov 22  }
  0x1a   :  { %s3172_s6 = sld [smem:[%s3530_s0 + %s3027_s15]]   ;;  %s3031_s15 = smov 23  }
  0x1b   :  { %s3182_s19 = sld [smem:[%s3530_s0 + %s3029_s28]]   ;;  %s3033_s28 = smov 25  }
  0x1c   :  { %s3192_s8 = sld [smem:[%s3530_s0 + %s3031_s15]]   ;;  %s3035_s15 = smov 27  }
  0x1d   :  { %3538 = sst [smem:[#allocation37_spill]] %s3157_s27 }
  0x1e   :  { %s3177_s27 = sld [smem:[%s3530_s0 + %s3028_s22]]   ;;  %s3032_s22 = smov 24  }
  0x1f   :  { %3539 = sst [smem:[#allocation38_spill]] %s3167_s12 }
  0x20   :  { %s3187_s12 = sld [smem:[%s3530_s0 + %s3030_s7]]   ;;  %s3034_s7 = smov 26  }
  0x21   :  { %s3202_s30 = sld [smem:[%s3530_s0 + %s3033_s28]]   ;;  %s3037_s28 = smov 29  }
  0x22   :  { %3542 = sst [smem:[#allocation41_spill]] %s3192_s8 }
  0x23   :  { %s3212_s8 = sld [smem:[%s3530_s0 + %s3035_s15]]   ;;  %s3039_s15 = smov 31  }
  0x24   :  { %3540 = sst [smem:[#allocation39_spill]] %s3177_s27 }
  0x25   :  { %s3197_s27 = sld [smem:[%s3530_s0 + %s3032_s22]]   ;;  %s3036_s22 = smov 28  }
  0x26   :  { %3541 = sst [smem:[#allocation40_spill]] %s3187_s12 }
  0x27   :  { %3544 = sst [smem:[#allocation43_spill]] %s3202_s30 }
  0x28   :  { %s3207_s12 = sld [smem:[%s3530_s0 + %s3034_s7]]   ;;  %s3038_s7 = smov 30  }
  0x29   :  { %3546 = sst [smem:[#allocation45_spill]] %s3212_s8 }
  0x2a   :  { %s3222_s30 = sld [smem:[%s3530_s0 + %s3037_s28]]   ;;  %s3041_s28 = smov 33  }
  0x2b   :  { %3543 = sst [smem:[#allocation42_spill]] %s3197_s27 }
  0x2c   :  { %s3217_s27 = sld [smem:[%s3530_s0 + %s3036_s22]]   ;;  %s3040_s22 = smov 32  }
  0x2d   :  { %s3232_s8 = sld [smem:[%s3530_s0 + %s3039_s15]]   ;;  %s3043_s15 = smov 35  }
  0x2e   :  { %3545 = sst [smem:[#allocation44_spill]] %s3207_s12 }
  0x2f   :  { %s3227_s12 = sld [smem:[%s3530_s0 + %s3038_s7]]   ;;  %s3042_s7 = smov 34  }
  0x30   :  { %3548 = sst [smem:[#allocation47_spill]] %s3222_s30 }
  0x31   :  { %s3242_s30 = sld [smem:[%s3530_s0 + %s3041_s28]]   ;;  %s3045_s28 = smov 37  }
  0x32   :  { %3547 = sst [smem:[#allocation46_spill]] %s3217_s27 }
  0x33   :  { %3550 = sst [smem:[#allocation49_spill]] %s3232_s8 }
  0x34   :  { %s3237_s27 = sld [smem:[%s3530_s0 + %s3040_s22]]   ;;  %s3044_s22 = smov 36  }
  0x35   :  { %3549 = sst [smem:[#allocation48_spill]] %s3227_s12 }
  0x36   :  { %s3247_s12 = sld [smem:[%s3530_s0 + %s3042_s7]]   ;;  %s3046_s7 = smov 38  }
  0x37   :  { %3552 = sst [smem:[#allocation51_spill]] %s3242_s30 }
  0x38   :  { %s3252_s8 = sld [smem:[%s3530_s0 + %s3043_s15]]   ;;  %s3047_s15 = smov 39  }
  0x39   :  { %s3262_s30 = sld [smem:[%s3530_s0 + %s3045_s28]]  }
  0x3a   :  { %3551 = sst [smem:[#allocation50_spill]] %s3237_s27 }
  0x3b   :  { %s3257_s27 = sld [smem:[%s3530_s0 + %s3044_s22]]   ;;  %s3048_s22 = smov 40  }
  0x3c   :  { %3553 = sst [smem:[#allocation52_spill]] %s3247_s12 }
  0x3d   :  { %s3267_s12 = sld [smem:[%s3530_s0 + %s3046_s7]]  }
  0x3e   :  { %s3272_s24 = sld [smem:[%s3530_s0 + %s3047_s15]]  }
  0x41   :  { %3554 = sst [smem:[#allocation53_spill]] %s3257_s27 }
  0x42   :  { %s3277_s27 = sld [smem:[%s3530_s0 + %s3048_s22]]  }
  0x43   :  { %87 = vsyncpa [#allocation3], 0 }
  0x44   :  { %88 = vsyncpa [#allocation6], 0 }
  0x45   :  { %89 = vsyncpa [#allocation9], 0 }
  0x46   :  { %90 = vsyncpa [#allocation12], 0 }
  0x47   :  { %91 = vsyncpa [#allocation15], 0 }
  0x48   :  { %92 = vsyncpa [#allocation18], 0 }
  0x49   :  { %93 = vsyncpa [#allocation4], 0 }
  0x4a   :  { %94 = vsyncpa [#allocation22], 0  ;;  %s3049_s28 = smov [#allocation5]   ;;  %s3050_s2 = smov [#allocation8]  }
  0x4b   :  { %s116_s1 = sshll.u32 %s3049_s28, 4  ;;  %s144_s7 = sshll.u32 %s3050_s2, 4  ;;  %s117_s1 = int_to_ptr.vmem [resolvable:$true] %s116_s1  ;;  %s3279_s7 = int_to_ptr.vmem [resolvable:$true] %s144_s7 }
  0x4c   :  { %s2707_s0 = scalar_lea.hbm %s3092_s17, 2048 }
  0x4d   :  { %p2708_p0 = scmp.ne.s32.totalorder %s3092_s17, %s2707_s0  ;;  %p2711_p1 = scmp.lt.u32.totalorder %s2707_s0, %s3092_s17 }
  0x4f   :  { %p2713_p2 = pnand %p2711_p1, %p2708_p0 }
  0x51   :  { %2716 = shalt.err (!%p2713_p2)
}
  0x52   :  { %s2717_s10 = scalar_lea.vmem %s117_s1, 2048  ;;  %p2722_p4 = scmp.lt.s32.totalorder %s117_s1, %s117_s1 }
  0x53   :  { %p2718_p3 = scmp.ne.s32.totalorder %s117_s1, %s2717_s10  ;;  %p2723_p5 = scmp.lt.s32.totalorder %s2717_s10, %s2717_s10 }
  0x55   :  { %p2724_p6 = por %p2723_p5, %p2722_p4 }
  0x57   :  { %p2725_p7 = pnand %p2724_p6, %p2718_p3 }
  0x59   :  { %2728 = shalt.err (!%p2725_p7)
}
  0x5a   :  { %s3051_s11 = smov 128   ;;  %s3052_s15 = smov 8  }
  0x5b   :  { %122 = dma.hbm_to_vmem [thread:$0]  %s3092_s17, 2048, %s117_s1, [#allocation6], %s3051_s11, %s3051_s11, %s3052_s15  }
  0x5c   :  { %s2729_s16 = scalar_lea.hbm %s3112_s3, 4096 }
  0x5d   :  { %p2730_p8 = scmp.ne.s32.totalorder %s3112_s3, %s2729_s16  ;;  %p2733_p9 = scmp.lt.u32.totalorder %s2729_s16, %s3112_s3 }
  0x5f   :  { %p2735_p10 = pnand %p2733_p9, %p2730_p8 }
  0x61   :  { %2738 = shalt.err (!%p2735_p10)
}
  0x62   :  { %s2739_s18 = scalar_lea.vmem %s3279_s7, 4096  ;;  %p2744_p12 = scmp.lt.s32.totalorder %s3279_s7, %s3279_s7 }
  0x63   :  { %p2740_p11 = scmp.ne.s32.totalorder %s3279_s7, %s2739_s18  ;;  %p2745_p13 = scmp.lt.s32.totalorder %s2739_s18, %s2739_s18 }
  0x65   :  { %p2746_p0 = por %p2745_p13, %p2744_p12 }
  0x67   :  { %p2747_p1 = pnand %p2746_p0, %p2740_p11 }
  0x69   :  { %2750 = shalt.err (!%p2747_p1)
}
  0x6a   :  { %s3053_s22 = smov 256   ;;  %s3054_s17 = smov 16  }
  0x6b   :  { %150 = dma.hbm_to_vmem [thread:$0]  %s3112_s3, 4096, %s3279_s7, [#allocation9], %s3053_s22, %s3053_s22, %s3054_s17  }
  0x6c   :  { %s3055_s23 = smov [#allocation11]   ;;  %s3056_s28 = smov [#allocation14]  }
  0x6d   :  { %s180_s26 = sshll.u32 %s3055_s23, 4  ;;  %s208_s1 = sshll.u32 %s3056_s28, 4  ;;  %s181_s26 = int_to_ptr.vmem [resolvable:$true] %s180_s26  ;;  %s3300_s1 = int_to_ptr.vmem [resolvable:$true] %s208_s1 }
  0x6e   :  { %s2751_s2 = scalar_lea.hbm %s3152_s20, 2048 }
  0x6f   :  { %p2752_p2 = scmp.ne.s32.totalorder %s3152_s20, %s2751_s2  ;;  %p2755_p3 = scmp.lt.u32.totalorder %s2751_s2, %s3152_s20 }
  0x71   :  { %p2757_p4 = pnand %p2755_p3, %p2752_p2 }
  0x73   :  { %2760 = shalt.err (!%p2757_p4)
}
  0x74   :  { %s2761_s0 = scalar_lea.vmem %s181_s26, 2048  ;;  %p2766_p6 = scmp.lt.s32.totalorder %s181_s26, %s181_s26 }
  0x75   :  { %p2762_p5 = scmp.ne.s32.totalorder %s181_s26, %s2761_s0  ;;  %p2767_p7 = scmp.lt.s32.totalorder %s2761_s0, %s2761_s0 }
  0x77   :  { %p2768_p8 = por %p2767_p7, %p2766_p6 }
  0x79   :  { %p2769_p9 = pnand %p2768_p8, %p2762_p5 }
  0x7b   :  { %2772 = shalt.err (!%p2769_p9)
}
  0x7c   :  { %186 = dma.hbm_to_vmem [thread:$0]  %s3152_s20, 2048, %s181_s26, [#allocation12], %s3051_s11, %s3051_s11, %s3052_s15  }
  0x7d   :  { %s2773_s3 = scalar_lea.hbm %s3172_s6, 4096 }
  0x7e   :  { %p2774_p10 = scmp.ne.s32.totalorder %s3172_s6, %s2773_s3  ;;  %p2777_p11 = scmp.lt.u32.totalorder %s2773_s3, %s3172_s6 }
  0x80   :  { %p2779_p12 = pnand %p2777_p11, %p2774_p10 }
  0x82   :  { %2782 = shalt.err (!%p2779_p12)
}
  0x83   :  { %s2783_s7 = scalar_lea.vmem %s3300_s1, 4096  ;;  %p2788_p0 = scmp.lt.s32.totalorder %s3300_s1, %s3300_s1 }
  0x84   :  { %p2784_p13 = scmp.ne.s32.totalorder %s3300_s1, %s2783_s7  ;;  %p2789_p1 = scmp.lt.s32.totalorder %s2783_s7, %s2783_s7 }
  0x86   :  { %p2790_p2 = por %p2789_p1, %p2788_p0 }
  0x88   :  { %p2791_p3 = pnand %p2790_p2, %p2784_p13 }
  0x8a   :  { %2794 = shalt.err (!%p2791_p3)
}
  0x8b   :  { %214 = dma.hbm_to_vmem [thread:$0]  %s3172_s6, 4096, %s3300_s1, [#allocation15], %s3053_s22, %s3053_s22, %s3054_s17  }
  0x8c   :  { %s3057_s20 = smov [#allocation17]   ;;  %s3058_s16 = smov [#allocation2]  }
  0x8d   :  { %s260_s10 = sshll.u32 %s3057_s20, 4  ;;  %s102_s18 = sshll.u32 %s3058_s16, 4  ;;  %s261_s10 = int_to_ptr.vmem [resolvable:$true] %s260_s10  ;;  %s3321_s18 = int_to_ptr.vmem [resolvable:$true] %s102_s18 }
  0x8e   :  { %s2795_s23 = scalar_lea.hbm %s3252_s8, 4096 }
  0x8f   :  { %p2796_p4 = scmp.ne.s32.totalorder %s3252_s8, %s2795_s23  ;;  %p2799_p5 = scmp.lt.u32.totalorder %s2795_s23, %s3252_s8 }
  0x91   :  { %p2801_p6 = pnand %p2799_p5, %p2796_p4 }
  0x93   :  { %2804 = shalt.err (!%p2801_p6)
}
  0x94   :  { %s2805_s26 = scalar_lea.vmem %s261_s10, 4096  ;;  %p2810_p8 = scmp.lt.s32.totalorder %s261_s10, %s261_s10 }
  0x95   :  { %p2806_p7 = scmp.ne.s32.totalorder %s261_s10, %s2805_s26  ;;  %p2811_p9 = scmp.lt.s32.totalorder %s2805_s26, %s2805_s26 }
  0x97   :  { %p2812_p10 = por %p2811_p9, %p2810_p8 }
  0x99   :  { %p2813_p11 = pnand %p2812_p10, %p2806_p7 }
  0x9b   :  { %2816 = shalt.err (!%p2813_p11)
}
  0x9c   :  { %266 = dma.hbm_to_vmem [thread:$0]  %s3252_s8, 4096, %s261_s10, [#allocation18], %s3053_s22, %s3053_s22, %s3054_s17  }
  0x9d   :  { %s2817_s6 = scalar_lea.hbm %s3082_s9, 2048 }
  0x9e   :  { %p2818_p12 = scmp.ne.s32.totalorder %s3082_s9, %s2817_s6  ;;  %p2821_p13 = scmp.lt.u32.totalorder %s2817_s6, %s3082_s9 }
  0xa0   :  { %p2823_p0 = pnand %p2821_p13, %p2818_p12 }
  0xa2   :  { %2826 = shalt.err (!%p2823_p0)
}
  0xa3   :  { %s2827_s28 = scalar_lea.vmem %s3321_s18, 2048  ;;  %p2832_p2 = scmp.lt.s32.totalorder %s3321_s18, %s3321_s18 }
  0xa4   :  { %p2828_p1 = scmp.ne.s32.totalorder %s3321_s18, %s2827_s28  ;;  %p2833_p3 = scmp.lt.s32.totalorder %s2827_s28, %s2827_s28 }
  0xa6   :  { %p2834_p4 = por %p2833_p3, %p2832_p2 }
  0xa8   :  { %p2835_p5 = pnand %p2834_p4, %p2828_p1 }
  0xaa   :  { %2838 = shalt.err (!%p2835_p5)
}
  0xab   :  { %108 = dma.hbm_to_vmem [thread:$0]  %s3082_s9, 2048, %s3321_s18, [#allocation3], %s3051_s11, %s3051_s11, %s3052_s15  }
  0xac   :  { %s3059_s8 = smov [#allocation7]   ;;  %s3060_s17 = smov [#allocation10]  }
  0xad   :  { %s130_s22 = sshll.u32 %s3059_s8, 4  ;;  %s158_s1 = sshll.u32 %s3060_s17, 4  ;;  %s131_s22 = int_to_ptr.vmem [resolvable:$true] %s130_s22  ;;  %s3342_s1 = int_to_ptr.vmem [resolvable:$true] %s158_s1 }
  0xae   :  { %s2839_s2 = scalar_lea.hbm %s3102_s25, 2048 }
  0xaf   :  { %p2840_p6 = scmp.ne.s32.totalorder %s3102_s25, %s2839_s2  ;;  %p2843_p7 = scmp.lt.u32.totalorder %s2839_s2, %s3102_s25 }
  0xb1   :  { %p2845_p8 = pnand %p2843_p7, %p2840_p6 }
  0xb3   :  { %2848 = shalt.err (!%p2845_p8)
}
  0xb4   :  { %s2849_s0 = scalar_lea.vmem %s131_s22, 2048  ;;  %p2854_p10 = scmp.lt.s32.totalorder %s131_s22, %s131_s22 }
  0xb5   :  { %p2850_p9 = scmp.ne.s32.totalorder %s131_s22, %s2849_s0  ;;  %p2855_p11 = scmp.lt.s32.totalorder %s2849_s0, %s2849_s0 }
  0xb7   :  { %p2856_p12 = por %p2855_p11, %p2854_p10 }
  0xb9   :  { %p2857_p13 = pnand %p2856_p12, %p2850_p9 }
  0xbb   :  { %2860 = shalt.err (!%p2857_p13)
}
  0xbc   :  { %136 = dma.hbm_to_vmem [thread:$0]  %s3102_s25, 2048, %s131_s22, [#allocation6], %s3051_s11, %s3051_s11, %s3052_s15  }
  0xbd   :  { %s2861_s9 = scalar_lea.hbm %s3122_s14, 4096 }
  0xbe   :  { %p2862_p0 = scmp.ne.s32.totalorder %s3122_s14, %s2861_s9  ;;  %p2865_p1 = scmp.lt.u32.totalorder %s2861_s9, %s3122_s14 }
  0xc0   :  { %p2867_p2 = pnand %p2865_p1, %p2862_p0 }
  0xc2   :  { %2870 = shalt.err (!%p2867_p2)
}
  0xc3   :  { %s2871_s3 = scalar_lea.vmem %s3342_s1, 4096  ;;  %p2876_p4 = scmp.lt.s32.totalorder %s3342_s1, %s3342_s1 }
  0xc4   :  { %p2872_p3 = scmp.ne.s32.totalorder %s3342_s1, %s2871_s3  ;;  %p2877_p5 = scmp.lt.s32.totalorder %s2871_s3, %s2871_s3 }
  0xc6   :  { %p2878_p6 = por %p2877_p5, %p2876_p4 }
  0xc8   :  { %p2879_p7 = pnand %p2878_p6, %p2872_p3 }
  0xca   :  { %2882 = shalt.err (!%p2879_p7)
}
  0xcb   :  { %164 = dma.hbm_to_vmem [thread:$0]  %s3122_s14, 4096, %s3342_s1, [#allocation9], %s3051_s11, %s3051_s11, %s3052_s15  }
  0xcc   :  { %s3061_s25 = smov [#allocation13]   ;;  %s3062_s20 = smov [#allocation16]  }
  0xcd   :  { %s194_s7 = sshll.u32 %s3061_s25, 4  ;;  %s222_s10 = sshll.u32 %s3062_s20, 4  ;;  %s195_s7 = int_to_ptr.vmem [resolvable:$true] %s194_s7  ;;  %s3363_s10 = int_to_ptr.vmem [resolvable:$true] %s222_s10 }
  0xce   :  { %s2883_s16 = scalar_lea.hbm %s3162_s4, 2048 }
  0xcf   :  { %p2884_p8 = scmp.ne.s32.totalorder %s3162_s4, %s2883_s16  ;;  %p2887_p9 = scmp.lt.u32.totalorder %s2883_s16, %s3162_s4 }
  0xd1   :  { %p2889_p10 = pnand %p2887_p9, %p2884_p8 }
  0xd3   :  { %2892 = shalt.err (!%p2889_p10)
}
  0xd4   :  { %s2893_s18 = scalar_lea.vmem %s195_s7, 2048  ;;  %p2898_p12 = scmp.lt.s32.totalorder %s195_s7, %s195_s7 }
  0xd5   :  { %p2894_p11 = scmp.ne.s32.totalorder %s195_s7, %s2893_s18  ;;  %p2899_p13 = scmp.lt.s32.totalorder %s2893_s18, %s2893_s18 }
  0xd7   :  { %p2900_p0 = por %p2899_p13, %p2898_p12 }
  0xd9   :  { %p2901_p1 = pnand %p2900_p0, %p2894_p11 }
  0xdb   :  { %2904 = shalt.err (!%p2901_p1)
}
  0xdc   :  { %200 = dma.hbm_to_vmem [thread:$0]  %s3162_s4, 2048, %s195_s7, [#allocation12], %s3051_s11, %s3051_s11, %s3052_s15  }
  0xdd   :  { %s2905_s14 = scalar_lea.hbm %s3182_s19, 4096 }
  0xde   :  { %p2906_p2 = scmp.ne.s32.totalorder %s3182_s19, %s2905_s14  ;;  %p2909_p3 = scmp.lt.u32.totalorder %s2905_s14, %s3182_s19 }
  0xe0   :  { %p2911_p4 = pnand %p2909_p3, %p2906_p2 }
  0xe2   :  { %2914 = shalt.err (!%p2911_p4)
}
  0xe3   :  { %s2915_s23 = scalar_lea.vmem %s3363_s10, 4096  ;;  %p2920_p6 = scmp.lt.s32.totalorder %s3363_s10, %s3363_s10 }
  0xe4   :  { %p2916_p5 = scmp.ne.s32.totalorder %s3363_s10, %s2915_s23  ;;  %p2921_p7 = scmp.lt.s32.totalorder %s2915_s23, %s2915_s23 }
  0xe6   :  { %p2922_p8 = por %p2921_p7, %p2920_p6 }
  0xe8   :  { %p2923_p9 = pnand %p2922_p8, %p2916_p5 }
  0xea   :  { %2926 = shalt.err (!%p2923_p9)
}
  0xeb   :  { %228 = dma.hbm_to_vmem [thread:$0]  %s3182_s19, 4096, %s3363_s10, [#allocation15], %s3051_s11, %s3051_s11, %s3052_s15  }
  0xec   :  { %s3063_s4 = smov [#allocation19]   ;;  %s2927_s6 = scalar_lea.hbm %s3262_s30, 4096 }
  0xed   :  { %s274_s26 = sshll.u32 %s3063_s4, 4  ;;  %p2928_p10 = scmp.ne.s32.totalorder %s3262_s30, %s2927_s6  ;;  %s275_s26 = int_to_ptr.vmem [resolvable:$true] %s274_s26 }
  0xee   :  { %p2931_p11 = scmp.lt.u32.totalorder %s2927_s6, %s3262_s30 }
  0xf0   :  { %p2933_p12 = pnand %p2931_p11, %p2928_p10 }
  0xf2   :  { %2936 = shalt.err (!%p2933_p12)
}
  0xf3   :  { %s2937_s28 = scalar_lea.vmem %s275_s26, 4096  ;;  %p2942_p0 = scmp.lt.s32.totalorder %s275_s26, %s275_s26 }
  0xf4   :  { %p2938_p13 = scmp.ne.s32.totalorder %s275_s26, %s2937_s28  ;;  %p2943_p1 = scmp.lt.s32.totalorder %s2937_s28, %s2937_s28 }
  0xf6   :  { %p2944_p2 = por %p2943_p1, %p2942_p0 }
  0xf8   :  { %p2945_p3 = pnand %p2944_p2, %p2938_p13 }
  0xfa   :  { %2948 = shalt.err (!%p2945_p3)
}
  0xfb   :  { %280 = dma.hbm_to_vmem [thread:$0]  %s3262_s30, 4096, %s275_s26, [#allocation18], %s3051_s11, %s3051_s11, %s3052_s15  }
  0xfc   :  { %2993 = dma.done.wait [#allocation3], 2048  }
  0xfd   :  { %2994 = vsyncadd [#allocation3], 4294965248 }
  0xfe   :  { %2995 = dma.done.wait [#allocation6], 4096  }
  0xff   :  { %2996 = vsyncadd [#allocation6], 4294963200 }
 0x100   :  { %2997 = dma.done.wait [#allocation9], 8192  }
 0x101   :  { %2998 = vsyncadd [#allocation9], 4294959104 }
 0x102   :  { %2999 = dma.done.wait [#allocation12], 4096  }
 0x103   :  { %3000 = vsyncadd [#allocation12], 4294963200 }
 0x104   :  { %3001 = dma.done.wait [#allocation15], 8192  }
 0x105   :  { %3002 = vsyncadd [#allocation15], 4294959104 }
 0x106   :  { %3003 = dma.done.wait [#allocation18], 8192  }
 0x107   :  { %3004 = vsyncadd [#allocation18], 4294959104  ;;  %v3064_v0 = vmov 0.0|0.0   ;;  %vm3065_vm0 = vmmov 0   ;;  %v3066_v1 = vmov 0.0   ;;  %v317_v2 = vld [vmem:[#allocation2] sm:$0xff] }
 0x108   :  { %2293 = vmatprep.subr.bf16.mxu0 %v3064_v0  ;;  %2115 = vmatprep.mubr.msk.f32.mxu0 %vm3065_vm0, %v3066_v1  ;;  %v318_v3 = vld [vmem:[#allocation2 + $0x8] sm:$0xff]  ;;  %v319_v4 = vld [vmem:[#allocation2 + $0x10] sm:$0xff]  ;;  %v320_v6 = vld [vmem:[#allocation2 + $0x18] sm:$0xff]  ;;  %s3559_s19 = sld [smem:[#allocation35_spill]]  ;;  %s3560_s30 = sld [smem:[#allocation36_spill]] }
 0x109   :  { %2317 = vmatprep.subr.bf16.mxu1 %v3064_v0  ;;  %2150 = vmatprep.mubr.msk.f32.mxu1 %vm3065_vm0, %v3066_v1  ;;  %v2294_v5 = vpack.c.bf16 %v318_v3, %v317_v2  ;;  %v2297_v7 = vpack.c.bf16 %v320_v6, %v319_v4  ;;  %v321_v8 = vld [vmem:[#allocation2 + $0x20] sm:$0xff]  ;;  %v322_v9 = vld [vmem:[#allocation2 + $0x28] sm:$0xff]  ;;  %v412_v12 = vld [vmem:[#allocation5 + $0x10] sm:$0xff]  ;;  %s3561_s11 = sld [smem:[#allocation37_spill]]  ;;  %s3562_s15 = sld [smem:[#allocation38_spill]] }
 0x10a   :  { %v410_v10 = vld [vmem:[#allocation5] sm:$0xff]  ;;  %v411_v11 = vld [vmem:[#allocation5 + $0x8] sm:$0xff]  ;;  %v413_v13 = vld [vmem:[#allocation5 + $0x18] sm:$0xff]  ;;  %v2300_v14 = vpack.c.bf16 %v322_v9, %v321_v8  ;;  %s3563_s8 = sld [smem:[#allocation41_spill]]  ;;  %s3564_s22 = sld [smem:[#allocation42_spill]] }
 0x10b   :  { %2295 = vmatpush3.bf16.msra.mxu0 %v2294_v5  ;;  %v2318_v15 = vpack.c.bf16 %v411_v11, %v410_v10  ;;  %v323_v16 = vld [vmem:[#allocation2 + $0x30] sm:$0xff]  ;;  %v324_v17 = vld [vmem:[#allocation2 + $0x38] sm:$0xff]  ;;  %v2321_v18 = vpack.c.bf16 %v413_v13, %v412_v12  ;;  %v414_v19 = vld [vmem:[#allocation5 + $0x20] sm:$0xff]  ;;  %s3565_s17 = sld [smem:[#allocation39_spill]]  ;;  %s3566_s1 = sld [smem:[#allocation40_spill]] }
 0x10c   :  { %2296 = vmatprep.subr.bf16.mxu0 %v3064_v0  ;;  %v415_v20 = vld [vmem:[#allocation5 + $0x28] sm:$0xff]  ;;  %v2303_v21 = vpack.c.bf16 %v324_v17, %v323_v16  ;;  %v325_v22 = vld [vmem:[#allocation2 + $0x40] sm:$0xff]  ;;  %v416_v25 = vld [vmem:[#allocation5 + $0x30] sm:$0xff]  ;;  %s3567_s2 = sld [smem:[#allocation43_spill]]  ;;  %s3568_s0 = sld [smem:[#allocation44_spill]] }
 0x10d   :  { %2319 = vmatpush3.bf16.msra.mxu1 %v2318_v15  ;;  %v326_v23 = vld [vmem:[#allocation2 + $0x48] sm:$0xff]  ;;  %v2324_v24 = vpack.c.bf16 %v415_v20, %v414_v19  ;;  %v417_v26 = vld [vmem:[#allocation5 + $0x38] sm:$0xff]  ;;  %v327_v28 = vld [vmem:[#allocation2 + $0x50] sm:$0xff]  ;;  %s3569_s9 = sld [smem:[#allocation49_spill]]  ;;  %s3570_s3 = sld [smem:[#allocation45_spill]] }
 0x10e   :  { %2320 = vmatprep.subr.bf16.mxu1 %v3064_v0  ;;  %v2306_v27 = vpack.c.bf16 %v326_v23, %v325_v22  ;;  %v328_v29 = vld [vmem:[#allocation2 + $0x58] sm:$0xff]  ;;  %v2327_v30 = vpack.c.bf16 %v417_v26, %v416_v25  ;;  %v418_v31 = vld [vmem:[#allocation5 + $0x40] sm:$0xff]  ;;  %v419_v32 = vld [vmem:[#allocation5 + $0x48] sm:$0xff]  ;;  %s3571_s25 = sld [smem:[#allocation46_spill]]  ;;  %s3572_s7 = sld [smem:[#allocation47_spill]] }
 0x10f   :  { %2298 = vmatpush3.bf16.msra.mxu0 %v2297_v7  ;;  %v2309_v33 = vpack.c.bf16 %v328_v29, %v327_v28  ;;  %v329_v34 = vld [vmem:[#allocation2 + $0x60] sm:$0xff]  ;;  %v330_v35 = vld [vmem:[#allocation2 + $0x68] sm:$0xff]  ;;  %v2330_v36 = vpack.c.bf16 %v419_v32, %v418_v31  ;;  %v420_v37 = vld [vmem:[#allocation5 + $0x50] sm:$0xff]  ;;  %s3573_s20 = sld [smem:[#allocation48_spill]]  ;;  %s3574_s10 = sld [smem:[#allocation50_spill]] }
 0x110   :  { %2299 = vmatprep.subr.bf16.mxu0 %v3064_v0  ;;  %v421_v38 = vld [vmem:[#allocation5 + $0x58] sm:$0xff]  ;;  %v2312_v39 = vpack.c.bf16 %v330_v35, %v329_v34  ;;  %v331_v40 = vld [vmem:[#allocation2 + $0x70] sm:$0xff]  ;;  %v422_v43 = vld [vmem:[#allocation5 + $0x60] sm:$0xff]  ;;  %s3575_s16 = sld [smem:[#allocation51_spill]]  ;;  %s3576_s18 = sld [smem:[#allocation52_spill]] }
 0x111   :  { %2322 = vmatpush3.bf16.msra.mxu1 %v2321_v18  ;;  %v332_v41 = vld [vmem:[#allocation2 + $0x78] sm:$0xff]  ;;  %v2333_v42 = vpack.c.bf16 %v421_v38, %v420_v37  ;;  %v423_v44 = vld [vmem:[#allocation5 + $0x68] sm:$0xff]  ;;  %v316_v47 = vld [vmem:[%s3077_s5] sm:$0xff]  ;;  %s3555_s5 = sld [smem:[#allocation33_spill]]  ;;  %s3577_s14 = sld [smem:[#allocation53_spill]] }
 0x112   :  { %2323 = vmatprep.subr.bf16.mxu1 %v3064_v0  ;;  %v2315_v45 = vpack.c.bf16 %v332_v41, %v331_v40  ;;  %v2336_v46 = vpack.c.bf16 %v423_v44, %v422_v43  ;;  %v424_v48 = vld [vmem:[#allocation5 + $0x70] sm:$0xff]  ;;  %v425_v49 = vld [vmem:[#allocation5 + $0x78] sm:$0xff]  ;;  %v427_v51 = vld [vmem:[#allocation7] sm:$0xff]  ;;  %s3067_s23 = smov [#allocation21]  }
 0x113   :  { %2301 = vmatpush3.bf16.msra.mxu0 %v2300_v14  ;;  %v2339_v50 = vpack.c.bf16 %v425_v49, %v424_v48  ;;  %v428_v52 = vld [vmem:[#allocation7 + $0x8] sm:$0xff]  ;;  %v429_v53 = vld [vmem:[#allocation7 + $0x10] sm:$0xff]  ;;  %v430_v55 = vld [vmem:[#allocation7 + $0x18] sm:$0xff]  ;;  %s1795_s4 = sshll.u32 %s3067_s23, 4  ;;  %s1796_s4 = int_to_ptr.vmem [resolvable:$true] %s1795_s4 }
 0x114   :  { %2302 = vmatprep.subr.bf16.mxu0 %v3064_v0  ;;  %v2342_v54 = vpack.c.bf16 %v428_v52, %v427_v51  ;;  %v2345_v56 = vpack.c.bf16 %v430_v55, %v429_v53  ;;  %v431_v57 = vld [vmem:[#allocation7 + $0x20] sm:$0xff]  ;;  %v432_v58 = vld [vmem:[#allocation7 + $0x28] sm:$0xff]  ;;  %v433_v60 = vld [vmem:[#allocation7 + $0x30] sm:$0xff]  ;;  %s2949_s26 = scalar_lea.vmem %s1796_s4, 128  ;;  %p2954_p5 = scmp.lt.s32.totalorder %s1796_s4, %s1796_s4 }
 0x115   :  { %2325 = vmatpush3.bf16.msra.mxu1 %v2324_v24  ;;  %v2348_v59 = vpack.c.bf16 %v432_v58, %v431_v57  ;;  %v434_v61 = vld [vmem:[#allocation7 + $0x38] sm:$0xff]  ;;  %v435_v63 = vld [vmem:[#allocation7 + $0x40] sm:$0xff]  ;;  %v436_v2 = vld [vmem:[#allocation7 + $0x48] sm:$0xff]  ;;  %p2950_p4 = scmp.ne.s32.totalorder %s1796_s4, %s2949_s26  ;;  %p2955_p6 = scmp.lt.s32.totalorder %s2949_s26, %s2949_s26 }
 0x116   :  { %2326 = vmatprep.subr.bf16.mxu1 %v3064_v0  ;;  %v2351_v62 = vpack.c.bf16 %v434_v61, %v433_v60  ;;  %v2354_v3 = vpack.c.bf16 %v436_v2, %v435_v63  ;;  %v437_v4 = vld [vmem:[#allocation7 + $0x50] sm:$0xff]  ;;  %v438_v5 = vld [vmem:[#allocation7 + $0x58] sm:$0xff]  ;;  %v439_v7 = vld [vmem:[#allocation7 + $0x60] sm:$0xff] }
 0x117   :  { %2304 = vmatpush3.bf16.msra.mxu0 %v2303_v21  ;;  %v2357_v6 = vpack.c.bf16 %v438_v5, %v437_v4  ;;  %v440_v8 = vld [vmem:[#allocation7 + $0x68] sm:$0xff]  ;;  %v1853_v10 = vld [vmem:[%s3087_s13] ss:$0 sm:$0xff]  ;;  %v441_v14 = vld [vmem:[#allocation7 + $0x70] sm:$0xff]  ;;  %s3556_s13 = sld [smem:[#allocation34_spill]]  ;;  %p2956_p7 = por %p2955_p6, %p2954_p5 }
 0x118   :  { %2305 = vmatprep.subr.bf16.mxu0 %v3064_v0  ;;  %v2360_v9 = vpack.c.bf16 %v440_v8, %v439_v7  ;;  %v442_v15 = vld [vmem:[#allocation7 + $0x78] sm:$0xff]  ;;  %v1854_v17 = vld [vmem:[%s3097_s21] ss:$0 sm:$0xff]  ;;  %v445_v26 = vld [vmem:[#allocation8 + $0x8] sm:$0xff]  ;;  %s3557_s21 = sld [smem:[#allocation31_spill]] }
 0x119   :  { %2328 = vmatpush3.bf16.msra.mxu1 %v2327_v30  ;;  %v2363_v16 = vpack.c.bf16 %v442_v15, %v441_v14  ;;  %v1855_v21 = vld [vmem:[%s3107_s29] ss:$0 sm:$0xff]  ;;  %v446_v30 = vld [vmem:[#allocation8 + $0x10] sm:$0xff]  ;;  %v449_v31 = vld [vmem:[#allocation8 + $0x28] sm:$0xff]  ;;  %s3558_s29 = sld [smem:[#allocation32_spill]]  ;;  %p2957_p8 = pnand %p2956_p7, %p2950_p4 }
 0x11a   :  { %2329 = vmatprep.subr.bf16.mxu1 %v3064_v0  ;;  %v444_v28 = vld [vmem:[#allocation8] sm:$0xff]  ;;  %v451_v32 = vld [vmem:[#allocation8 + $0x38] sm:$0xff]  ;;  %v453_v37 = vld [vmem:[#allocation8 + $0x48] sm:$0xff] }
 0x11b   :  { %2307 = vmatpush3.bf16.msra.mxu0 %v2306_v27  ;;  %v447_v27 = vld [vmem:[#allocation8 + $0x18] sm:$0xff]  ;;  %v2369_v34 = vpack.c.bf16 %v451_v32, %v449_v31  ;;  %v448_v35 = vld [vmem:[#allocation8 + $0x20] sm:$0xff]  ;;  %v457_v48 = vld [vmem:[#allocation8 + $0x68] sm:$0xff] }
 0x11c   :  { %2308 = vmatprep.subr.bf16.mxu0 %v3064_v0  ;;  %v2365_v29 = vpack.c.bf16 %v447_v27, %v445_v26  ;;  %v455_v38 = vld [vmem:[#allocation8 + $0x58] sm:$0xff]  ;;  %v452_v41 = vld [vmem:[#allocation8 + $0x40] sm:$0xff]  ;;  %v458_v52 = vld [vmem:[#allocation8 + $0x70] sm:$0xff] }
 0x11d   :  { %2331 = vmatpush3.bf16.msra.mxu1 %v2330_v36  ;;  %v450_v36 = vld [vmem:[#allocation8 + $0x30] sm:$0xff]  ;;  %v2373_v40 = vpack.c.bf16 %v455_v38, %v453_v37  ;;  %v459_v49 = vld [vmem:[#allocation8 + $0x78] sm:$0xff]  ;;  %v456_v51 = vld [vmem:[#allocation8 + $0x60] sm:$0xff] }
 0x11e   :  { %2332 = vmatprep.subr.bf16.mxu1 %v3064_v0  ;;  %v2379_v53 = vpack.c.bf16 %v458_v52, %v456_v51  ;;  %v463_v55 = vld [vmem:[#allocation8 + $0x98] sm:$0xff]  ;;  %v460_v57 = vld [vmem:[#allocation8 + $0x80] sm:$0xff]  ;;  %v462_v58 = vld [vmem:[#allocation8 + $0x90] sm:$0xff] }
 0x11f   :  { %2310 = vmatpush3.bf16.msra.mxu0 %v2309_v33  ;;  %v2367_v33 = vpack.c.bf16 %v446_v30, %v444_v28  ;;  %v465_v60 = vld [vmem:[#allocation8 + $0xa8] sm:$0xff]  ;;  %v467_v61 = vld [vmem:[#allocation8 + $0xb8] sm:$0xff]  ;;  %v466_v2 = vld [vmem:[#allocation8 + $0xb0] sm:$0xff] }
 0x120   :  { %2311 = vmatprep.subr.bf16.mxu0 %v3064_v0  ;;  %v2385_v63 = vpack.c.bf16 %v467_v61, %v465_v60  ;;  %v471_v4 = vld [vmem:[#allocation8 + $0xd8] sm:$0xff]  ;;  %v468_v7 = vld [vmem:[#allocation8 + $0xc0] sm:$0xff]  ;;  %v470_v8 = vld [vmem:[#allocation8 + $0xd0] sm:$0xff] }
 0x121   :  { %2334 = vmatpush3.bf16.msra.mxu1 %v2333_v42  ;;  %v454_v42 = vld [vmem:[#allocation8 + $0x50] sm:$0xff]  ;;  %v480_v26 = vld [vmem:[#allocation10 + $0x18] sm:$0xff]  ;;  %v497_v27 = vld [vmem:[#allocation10 + $0xa0] sm:$0xff] }
 0x122   :  { %2335 = vmatprep.subr.bf16.mxu1 %v3064_v0  ;;  %v2375_v43 = vpack.c.bf16 %v454_v42, %v452_v41  ;;  %v474_v14 = vld [vmem:[#allocation8 + $0xf0] sm:$0xff]  ;;  %v498_v28 = vld [vmem:[#allocation10 + $0xa8] sm:$0xff]  ;;  %v481_v31 = vld [vmem:[#allocation10 + $0x20] sm:$0xff] }
 0x123   :  { %2313 = vmatpush3.bf16.msra.mxu0 %v2312_v39  ;;  %v2371_v39 = vpack.c.bf16 %v450_v36, %v448_v35  ;;  %v2405_v30 = vpack.c.bf16 %v498_v28, %v497_v27  ;;  %v482_v32 = vld [vmem:[#allocation10 + $0x28] sm:$0xff]  ;;  %v483_v37 = vld [vmem:[#allocation10 + $0x30] sm:$0xff]  ;;  %v484_v38 = vld [vmem:[#allocation10 + $0x38] sm:$0xff] }
 0x124   :  { %2314 = vmatprep.subr.bf16.mxu0 %v3064_v0  ;;  %v2407_v35 = vpack.c.bf16 %v482_v32, %v481_v31  ;;  %v2411_v41 = vpack.c.bf16 %v484_v38, %v483_v37  ;;  %v488_v51 = vld [vmem:[#allocation10 + $0x58] sm:$0xff]  ;;  %v505_v52 = vld [vmem:[#allocation10 + $0xe0] sm:$0xff]  ;;  %v880_v31 = vld [vmem:[#allocation11 + $0x8] sm:$0xff] }
 0x125   :  { %2337 = vmatpush3.bf16.msra.mxu1 %v2336_v46  ;;  %v1856_v60 = vld [vmem:[%s3555_s5] ss:$0 sm:$0xff]  ;;  %v881_v32 = vld [vmem:[#allocation11 + $0x10] sm:$0xff]  ;;  %v884_v37 = vld [vmem:[#allocation11 + $0x28] sm:$0xff] }
 0x126   :  { %2338 = vmatprep.subr.bf16.mxu1 %v3064_v0 }
 0x127   :  { %2316 = vmatpush3.bf16.msra.mxu0 %v2315_v45 }
 0x128   :  { %2341 = vmatprep.subr.bf16.mxu0 %v3064_v0 }
 0x129   :  { %2340 = vmatpush3.bf16.msra.mxu1 %v2339_v50  ;;  %v2377_v50 = vpack.c.bf16 %v459_v49, %v457_v48 }
 0x12a   :  { %2116 = vmatmul.mubr.f32.vlgmr.msra.gmra.mrb[0].mxu0 %v316_v47  ;;  %2366 = vmatprep.subr.bf16.mxu1 %v2365_v29 }
 0x12b   :  { %2185 = vmatprep.mubr.msk.f32.mxu0 %vm3065_vm0, %v3066_v1  ;;  %2343 = vmatpush3.bf16.msra.mxu0 %v2342_v54  ;;  %v461_v54 = vld [vmem:[#allocation8 + $0x88] sm:$0xff] }
 0x12c   :  { %2344 = vmatprep.subr.bf16.mxu0 %v3064_v0 }
 0x12f   :  { %2346 = vmatpush3.bf16.msra.mxu0 %v2345_v56  ;;  %v2381_v56 = vpack.c.bf16 %v463_v55, %v461_v54 }
 0x130   :  { %2347 = vmatprep.subr.bf16.mxu0 %v3064_v0 }
 0x133   :  { %2349 = vmatpush3.bf16.msra.mxu0 %v2348_v59  ;;  %v2383_v59 = vpack.c.bf16 %v462_v58, %v460_v57 }
 0x134   :  { %2350 = vmatprep.subr.bf16.mxu0 %v3064_v0 }
 0x137   :  { %2352 = vmatpush3.bf16.msra.mxu0 %v2351_v62  ;;  %v464_v62 = vld [vmem:[#allocation8 + $0xa0] sm:$0xff] }
 0x138   :  { %2353 = vmatprep.subr.bf16.mxu0 %v3064_v0  ;;  %v2387_v5 = vpack.c.bf16 %v466_v2, %v464_v62  ;;  %v1857_v62 = vld [vmem:[%s3556_s13] ss:$0 sm:$0xff] }
 0x13b   :  { %2355 = vmatpush3.bf16.msra.mxu0 %v2354_v3  ;;  %v469_v3 = vld [vmem:[#allocation8 + $0xc8] sm:$0xff] }
 0x13c   :  { %2356 = vmatprep.subr.bf16.mxu0 %v3064_v0 }
 0x13f   :  { %2358 = vmatpush3.bf16.msra.mxu0 %v2357_v6  ;;  %v2389_v6 = vpack.c.bf16 %v471_v4, %v469_v3  ;;  %v489_v3 = vld [vmem:[#allocation10 + $0x60] sm:$0xff]  ;;  %v490_v4 = vld [vmem:[#allocation10 + $0x68] sm:$0xff] }
 0x140   :  { %2359 = vmatprep.subr.bf16.mxu0 %v3064_v0 }
 0x143   :  { %2361 = vmatpush3.bf16.msra.mxu0 %v2360_v9  ;;  %v473_v9 = vld [vmem:[#allocation8 + $0xe8] sm:$0xff] }
 0x144   :  { %2362 = vmatprep.subr.bf16.mxu0 %v3064_v0 }
 0x147   :  { %2364 = vmatpush3.bf16.msra.mxu0 %v2363_v16  ;;  %v493_v16 = vld [vmem:[#allocation10 + $0x80] sm:$0xff] }
 0x1fd   :  { %v406_v11 = vpop.f32.mrb[0].mxu0 }
 0x1fe   :  { %v407_v12 = vadd.f32 %v1853_v10, %v406_v11  ;;  %v2117_v13 = vpop.f32.mrb[1].mxu0  ;;  %v475_v10 = vld [vmem:[#allocation8 + $0xf8] sm:$0xff]  ;;  %v2391_v11 = vpack.c.bf16 %v470_v8, %v468_v7 }
 0x1ff   :  { %v472_v13 = vld [vmem:[#allocation8 + $0xe0] sm:$0xff]  ;;  %v508_v7 = vld [vmem:[#allocation10 + $0xf8] sm:$0xff] }
 0x200   :  { %2151 = vmatmul.mubr.f32.vlgmr.msra.gmra.mrb[0].mxu1 %v407_v12  ;;  %v2395_v15 = vpack.c.bf16 %v474_v14, %v472_v13  ;;  %v476_v14 = vld [vmem:[%s3557_s21] sm:$0x3] }
 0x201   :  { %768 = vmatprep.mubr.f32.mxu1 %v3066_v1  ;;  %2368 = vmatpush1.bf16.msra.mxu1 %v2367_v33  ;;  %v499_v33 = vld [vmem:[#allocation10 + $0xb0] sm:$0xff] }
 0x202   :  { %2370 = vmatprep.subr.bf16.mxu1 %v2369_v34  ;;  %v500_v34 = vld [vmem:[#allocation10 + $0xb8] sm:$0xff] }
 0x203   :  { %v2409_v36 = vpack.c.bf16 %v500_v34, %v499_v33  ;;  %v882_v34 = vld [vmem:[#allocation11 + $0x18] sm:$0xff] }
 0x205   :  { %2372 = vmatpush1.bf16.msra.mxu1 %v2371_v39  ;;  %v501_v39 = vld [vmem:[#allocation10 + $0xc0] sm:$0xff] }
 0x206   :  { %2374 = vmatprep.subr.bf16.mxu1 %v2373_v40  ;;  %v502_v40 = vld [vmem:[#allocation10 + $0xc8] sm:$0xff] }
 0x207   :  { %v2413_v42 = vpack.c.bf16 %v502_v40, %v501_v39 }
 0x209   :  { %2376 = vmatpush1.bf16.msra.mxu1 %v2375_v43  ;;  %v485_v43 = vld [vmem:[#allocation10 + $0x40] sm:$0xff] }
 0x20a   :  { %2378 = vmatprep.subr.bf16.mxu1 %v2377_v50  ;;  %v487_v50 = vld [vmem:[#allocation10 + $0x50] sm:$0xff] }
 0x20b   :  { %v2419_v54 = vpack.c.bf16 %v488_v51, %v487_v50  ;;  %v889_v50 = vld [vmem:[#allocation11 + $0x50] sm:$0xff]  ;;  %v890_v51 = vld [vmem:[#allocation11 + $0x58] sm:$0xff] }
 0x20d   :  { %2380 = vmatpush1.bf16.msra.mxu1 %v2379_v53  ;;  %v506_v53 = vld [vmem:[#allocation10 + $0xe8] sm:$0xff] }
 0x20e   :  { %2382 = vmatprep.subr.bf16.mxu1 %v2381_v56  ;;  %v2421_v55 = vpack.c.bf16 %v506_v53, %v505_v52  ;;  %v2445_v52 = vpack.c.bf16 %v890_v51, %v889_v50  ;;  %v891_v53 = vld [vmem:[#allocation11 + $0x60] sm:$0xff]  ;;  %v919_v51 = vld [vmem:[#allocation14 + $0x30] sm:$0xff] }
 0x20f   :  { %v917_v50 = vld [vmem:[#allocation14 + $0x20] sm:$0xff] }
 0x211   :  { %2384 = vmatpush1.bf16.msra.mxu1 %v2383_v59 }
 0x212   :  { %2386 = vmatprep.subr.bf16.mxu1 %v2385_v63 }
 0x215   :  { %2388 = vmatpush1.bf16.msra.mxu1 %v2387_v5  ;;  %v2423_v5 = vpack.c.bf16 %v490_v4, %v489_v3  ;;  %v900_v3 = vld [vmem:[#allocation13 + $0x20] sm:$0xff]  ;;  %v901_v4 = vld [vmem:[#allocation13 + $0x28] sm:$0xff] }
 0x216   :  { %2390 = vmatprep.subr.bf16.mxu1 %v2389_v6  ;;  %v507_v6 = vld [vmem:[#allocation10 + $0xf0] sm:$0xff] }
 0x217   :  { %v2425_v8 = vpack.c.bf16 %v508_v7, %v507_v6  ;;  %v902_v6 = vld [vmem:[#allocation13 + $0x30] sm:$0xff]  ;;  %v903_v7 = vld [vmem:[#allocation13 + $0x38] sm:$0xff] }
 0x219   :  { %2392 = vmatpush1.bf16.msra.mxu1 %v2391_v11 }
 0x2d3   :  { %v586_v18 = vpop.f32.mrb[0].mxu1 }
 0x2d4   :  { %v587_v19 = vadd.f32 %v1854_v17, %v586_v18  ;;  %v2152_v20 = vpop.f32.mrb[1].mxu1  ;;  %v494_v17 = vld [vmem:[#allocation10 + $0x88] sm:$0xff]  ;;  %v477_v18 = vld [vmem:[#allocation10] sm:$0xff] }
 0x2d5   :  { %v478_v20 = vld [vmem:[#allocation10 + $0x8] sm:$0xff] }
 0x2d6   :  { %2186 = vmatmul.mubr.f32.vlgmr.msra.gmra.mrb[2].mxu0 %v587_v19  ;;  %v2397_v19 = vpack.c.bf16 %v494_v17, %v493_v16 }
 0x2d8   :  { %2398 = vmatprep.subr.bf16.mxu0 %v2397_v19 }
 0x3a9   :  { %v662_v22 = vpop.f32.mrb[2].mxu0 }
 0x3aa   :  { %v663_v23 = vadd.f32 %v1855_v21, %v662_v22  ;;  %v2187_v24 = vpop.f32.mrb[3].mxu0  ;;  %v495_v21 = vld [vmem:[#allocation10 + $0x90] sm:$0xff]  ;;  %v496_v22 = vld [vmem:[#allocation10 + $0x98] sm:$0xff] }
 0x3ab   :  { %v2401_v24 = vpack.c.bf16 %v496_v22, %v495_v21 }
 0x3ac   :  { %v666_v25 = vadd.f32 %v663_v23, %v407_v12  ;;  %v2393_v12 = vpack.c.bf16 %v475_v10, %v473_v9  ;;  %v2399_v23 = vpack.c.bf16 %v478_v20, %v477_v18  ;;  %v491_v9 = vld [vmem:[#allocation10 + $0x70] sm:$0xff]  ;;  %v492_v10 = vld [vmem:[#allocation10 + $0x78] sm:$0xff] }
 0x3ad   :  { %v2427_v11 = vpack.c.bf16 %v492_v10, %v491_v9  ;;  %v904_v9 = vld [vmem:[#allocation13 + $0x40] sm:$0xff]  ;;  %v905_v10 = vld [vmem:[#allocation13 + $0x48] sm:$0xff] }
 0x3ae   :  { %667 = vadd.xlane.f32.xlu0 %v666_v25  ;;  %2394 = vmatprep.subr.bf16.mxu1 %v2393_v12 }
 0x3af   :  { %2396 = vmatpush1.bf16.msra.mxu1 %v2395_v15  ;;  %2400 = vmatpush3.bf16.msra.mxu0 %v2399_v23 }
 0x3b0   :  { %2429 = vmatprep.subr.bf16.mxu1 %v3064_v0  ;;  %2402 = vmatprep.subr.bf16.mxu0 %v2401_v24 }
 0x43b   :  { %v668_v44 = vpop.xlane.xlu0 %667 }
 0x43c   :  { %v670_v45 = vmul.f32 0.0078125, %v668_v44  ;;  %v486_v44 = vld [vmem:[#allocation10 + $0x48] sm:$0xff] }
 0x43d   :  { %v2415_v48 = vpack.c.bf16 %v486_v44, %v485_v43  ;;  %v885_v43 = vld [vmem:[#allocation11 + $0x30] sm:$0xff]  ;;  %v886_v44 = vld [vmem:[#allocation11 + $0x38] sm:$0xff] }
 0x43e   :  { %v3426_v46 = vsub.f32 %v666_v25, %v670_v45  ;;  %v479_v25 = vld [vmem:[#allocation10 + $0x10] sm:$0xff] }
 0x43f   :  { %v2403_v29 = vpack.c.bf16 %v480_v26, %v479_v25  ;;  %v503_v45 = vld [vmem:[#allocation10 + $0xd0] sm:$0xff]  ;;  %v1858_v25 = vld [vmem:[%s3558_s29] ss:$0 sm:$0xff] }
 0x440   :  { %v672_v47 = vmul.f32 %v3426_v46, %v3426_v46 }
 0x441   :  { %2404 = vmatpush3.bf16.msra.mxu0 %v2403_v29 }
 0x442   :  { %673 = vadd.xlane.f32.xlu0 %v672_v47  ;;  %2406 = vmatprep.subr.bf16.mxu0 %v2405_v30  ;;  %v504_v47 = vld [vmem:[#allocation10 + $0xd8] sm:$0xff]  ;;  %v879_v30 = vld [vmem:[#allocation11] sm:$0xff] }
 0x443   :  { %v2417_v49 = vpack.c.bf16 %v504_v47, %v503_v45  ;;  %v2430_v33 = vpack.c.bf16 %v880_v31, %v879_v30  ;;  %v2439_v45 = vpack.c.bf16 %v886_v44, %v885_v43  ;;  %v887_v47 = vld [vmem:[#allocation11 + $0x40] sm:$0xff]  ;;  %v915_v44 = vld [vmem:[#allocation14 + $0x10] sm:$0xff] }
 0x444   :  { %v1861_v31 = vld [vmem:[%s3561_s11] ss:$0 sm:$0xff] }
 0x445   :  { %2408 = vmatpush3.bf16.msra.mxu0 %v2407_v35  ;;  %v2433_v35 = vpack.c.bf16 %v882_v34, %v881_v32 }
 0x446   :  { %2410 = vmatprep.subr.bf16.mxu0 %v2409_v36  ;;  %v883_v36 = vld [vmem:[#allocation11 + $0x20] sm:$0xff] }
 0x447   :  { %v2436_v38 = vpack.c.bf16 %v884_v37, %v883_v36 }
 0x449   :  { %2412 = vmatpush3.bf16.msra.mxu0 %v2411_v41 }
 0x44a   :  { %2414 = vmatprep.subr.bf16.mxu0 %v2413_v42 }
 0x44d   :  { %2416 = vmatpush3.bf16.msra.mxu0 %v2415_v48  ;;  %v888_v48 = vld [vmem:[#allocation11 + $0x48] sm:$0xff] }
 0x44e   :  { %2418 = vmatprep.subr.bf16.mxu0 %v2417_v49  ;;  %v2442_v49 = vpack.c.bf16 %v888_v48, %v887_v47  ;;  %v920_v47 = vld [vmem:[#allocation14 + $0x38] sm:$0xff] }
 0x451   :  { %2420 = vmatpush3.bf16.msra.mxu0 %v2419_v54  ;;  %v892_v54 = vld [vmem:[#allocation11 + $0x68] sm:$0xff] }
 0x452   :  { %2422 = vmatprep.subr.bf16.mxu0 %v2421_v55  ;;  %v2448_v55 = vpack.c.bf16 %v892_v54, %v891_v53  ;;  %v924_v53 = vld [vmem:[#allocation14 + $0x58] sm:$0xff]  ;;  %v2483_v54 = vpack.c.bf16 %v919_v51, %v917_v50  ;;  %v968_v50 = vld [vmem:[#allocation16 + $0xb0] sm:$0xff] }
 0x453   :  { %v969_v51 = vld [vmem:[#allocation16 + $0xb8] sm:$0xff] }
 0x455   :  { %2424 = vmatpush3.bf16.msra.mxu0 %v2423_v5  ;;  %v2460_v5 = vpack.c.bf16 %v901_v4, %v900_v3  ;;  %v925_v4 = vld [vmem:[#allocation14 + $0x60] sm:$0xff] }
 0x456   :  { %2426 = vmatprep.subr.bf16.mxu0 %v2425_v8  ;;  %v2463_v8 = vpack.c.bf16 %v903_v7, %v902_v6  ;;  %v930_v7 = vld [vmem:[#allocation14 + $0x88] sm:$0xff] }
 0x459   :  { %2428 = vmatpush3.bf16.msra.mxu0 %v2427_v11  ;;  %v2466_v11 = vpack.c.bf16 %v905_v10, %v904_v9  ;;  %v929_v10 = vld [vmem:[#allocation14 + $0x80] sm:$0xff] }
 0x45a   :  { %2453 = vmatprep.subr.bf16.mxu0 %v3064_v0 }
 0x4cf   :  { %v674_v56 = vpop.xlane.xlu0 %673 }
 0x4d0   :  { %v675_v57 = vmul.f32 0.0078125, %v674_v56  ;;  %v893_v56 = vld [vmem:[#allocation11 + $0x70] sm:$0xff] }
 0x4d2   :  { %v676_v58 = vadd.f32 1e-05, %v675_v57  ;;  %v894_v57 = vld [vmem:[#allocation11 + $0x78] sm:$0xff] }
 0x4d4   :  { %2689 = vrsqrt.f32 %v676_v58  ;;  %v2451_v58 = vpack.c.bf16 %v894_v57, %v893_v56  ;;  %v921_v56 = vld [vmem:[#allocation14 + $0x40] sm:$0xff]  ;;  %v923_v57 = vld [vmem:[#allocation14 + $0x50] sm:$0xff] }
 0x4de   :  { %v2690_v59 = vpop.eup %2689 }
 0x4df   :  { %v678_v61 = vmul.f32 %v2690_v59, %v3426_v46  ;;  %v694_v46 = vlaneseq  ;;  %v896_v59 = vld [vmem:[#allocation13] sm:$0xff] }
 0x4e1   :  { %v685_v63 = vmul.f32 %v1856_v60, %v678_v61  ;;  %v695_v12 = vshrl.u32 %v694_v46, 7  ;;  %v897_v60 = vld [vmem:[#allocation13 + $0x8] sm:$0xff]  ;;  %v898_v61 = vld [vmem:[#allocation13 + $0x10] sm:$0xff] }
 0x4e2   :  { %v906_v46 = vld [vmem:[#allocation13 + $0x50] sm:$0xff] }
 0x4e3   :  { %v692_v2 = vadd.f32 %v1857_v62, %v685_v63  ;;  %v3437_v13 = vsub.s32 0, %v695_v12  ;;  %v3440_v15 = vsub.s32 1, %v695_v12  ;;  %v2454_v62 = vpack.c.bf16 %v897_v60, %v896_v59  ;;  %v899_v63 = vld [vmem:[#allocation13 + $0x18] sm:$0xff] }
 0x4e4   :  { %v907_v12 = vld [vmem:[#allocation13 + $0x58] sm:$0xff] }
 0x4e5   :  { %769 = vmatmul.mubr.f32.vlgmr.msra.gmra.mrb[2].mxu1 %v692_v2  ;;  %v697_v16 = vrot.slane %v476_v14, %v3437_v13  ;;  %v701_v17 = vrot.slane %v476_v14, %v3440_v15  ;;  %v2469_v14 = vpack.c.bf16 %v907_v12, %v906_v46  ;;  %v934_v12 = vld [vmem:[#allocation14 + $0xa8] sm:$0xff] }
 0x4e6   :  { %2220 = vmatprep.mubr.msk.f32.mxu1 %vm3065_vm0, %v3066_v1  ;;  %2431 = vmatpush3.bf16.msra.mxu1 %v2430_v33 }
 0x4e7   :  { %2432 = vmatprep.subr.bf16.mxu1 %v3064_v0 }
 0x4ea   :  { %2434 = vmatpush3.bf16.msra.mxu1 %v2433_v35  ;;  %v1862_v35 = vld [vmem:[%s3562_s15] ss:$0 sm:$0xff] }
 0x4eb   :  { %2435 = vmatprep.subr.bf16.mxu1 %v3064_v0 }
 0x4ee   :  { %2437 = vmatpush3.bf16.msra.mxu1 %v2436_v38 }
 0x4ef   :  { %2438 = vmatprep.subr.bf16.mxu1 %v3064_v0 }
 0x4f2   :  { %2440 = vmatpush3.bf16.msra.mxu1 %v2439_v45  ;;  %v918_v45 = vld [vmem:[#allocation14 + $0x28] sm:$0xff] }
 0x4f3   :  { %2441 = vmatprep.subr.bf16.mxu1 %v3064_v0 }
 0x4f6   :  { %2443 = vmatpush3.bf16.msra.mxu1 %v2442_v49  ;;  %v2481_v49 = vpack.c.bf16 %v920_v47, %v918_v45 }
 0x4f7   :  { %2444 = vmatprep.subr.bf16.mxu1 %v3064_v0 }
 0x4fa   :  { %2446 = vmatpush3.bf16.msra.mxu1 %v2445_v52  ;;  %v922_v52 = vld [vmem:[#allocation14 + $0x48] sm:$0xff] }
 0x4fb   :  { %2447 = vmatprep.subr.bf16.mxu1 %v3064_v0 }
 0x4fe   :  { %2449 = vmatpush3.bf16.msra.mxu1 %v2448_v55  ;;  %v2485_v55 = vpack.c.bf16 %v924_v53, %v922_v52  ;;  %v2521_v53 = vpack.c.bf16 %v969_v51, %v968_v50 }
 0x4ff   :  { %2450 = vmatprep.subr.bf16.mxu1 %v3064_v0 }
 0x502   :  { %2452 = vmatpush3.bf16.msra.mxu1 %v2451_v58  ;;  %v2487_v58 = vpack.c.bf16 %v923_v57, %v921_v56  ;;  %v970_v56 = vld [vmem:[#allocation16 + $0xc0] sm:$0xff]  ;;  %v971_v57 = vld [vmem:[#allocation16 + $0xc8] sm:$0xff] }
 0x5b8   :  { %v770_v18 = vpop.f32.mrb[2].mxu1 }
 0x5b9   :  { %v771_v19 = vadd.f32 %v770_v18, %v697_v16  ;;  %v772_v20 = vpop.f32.mrb[3].mxu1  ;;  %v908_v16 = vld [vmem:[#allocation13 + $0x60] sm:$0xff] }
 0x5ba   :  { %v773_v21 = vadd.f32 %v772_v20, %v701_v17  ;;  %v909_v17 = vld [vmem:[#allocation13 + $0x68] sm:$0xff] }
 0x5bb   :  { %v775_v23 = vmax.f32 %v771_v19, 0.0  ;;  %v2472_v18 = vpack.c.bf16 %v909_v17, %v908_v16  ;;  %v933_v16 = vld [vmem:[#allocation14 + $0xa0] sm:$0xff] }
 0x5bc   :  { %v776_v22 = vmax.f32 %v773_v21, 0.0 }
 0x5be   :  { %847 = vmatprep.mubr.f32.mxu0 %v776_v22 }
 0x5bf   :  { %848 = vmatmul.mubr.f32.vlgmr.msra.gmra.mrb[4].mxu0 %v775_v23  ;;  %v1859_v23 = vld [vmem:[%s3559_s19] ss:$0 sm:$0xff] }
 0x5c0   :  { %2255 = vmatprep.mubr.msk.f32.mxu0 %vm3065_vm0, %v3066_v1  ;;  %2455 = vmatpush3.bf16.msra.mxu0 %v2454_v62 }
 0x5c1   :  { %2456 = vmatprep.subr.bf16.mxu0 %v3064_v0 }
 0x692   :  { %v1959_v24 = vpop.f32.mrb[4].mxu0 }
 0x693   :  { %v1960_v26 = vpop.f32.mrb[5].mxu0 }
 0x694   :  { %v1961_v27 = vadd.f32 %v1960_v26, %v1959_v24 }
 0x696   :  { %v850_v28 = vadd.f32 %v1961_v27, %v1858_v25  ;;  %v1860_v25 = vld [vmem:[%s3560_s30] ss:$0 sm:$0xff] }
 0x698   :  { %v853_v29 = vadd.f32 %v850_v28, %v692_v2  ;;  %v2457_v2 = vpack.c.bf16 %v899_v63, %v898_v61  ;;  %v910_v28 = vld [vmem:[#allocation13 + $0x70] sm:$0xff]  ;;  %v926_v63 = vld [vmem:[#allocation14 + $0x68] sm:$0xff] }
 0x69a   :  { %854 = vadd.xlane.f32.xlu1 %v853_v29  ;;  %2458 = vmatpush3.bf16.msra.mxu0 %v2457_v2  ;;  %v928_v2 = vld [vmem:[#allocation14 + $0x78] sm:$0xff] }
 0x69b   :  { %2459 = vmatprep.subr.bf16.mxu0 %v3064_v0  ;;  %v2489_v3 = vpack.c.bf16 %v928_v2, %v926_v63  ;;  %v972_v63 = vld [vmem:[#allocation16 + $0xd0] sm:$0xff]  ;;  %v973_v2 = vld [vmem:[#allocation16 + $0xd8] sm:$0xff] }
 0x69e   :  { %2461 = vmatpush3.bf16.msra.mxu0 %v2460_v5  ;;  %v927_v5 = vld [vmem:[#allocation14 + $0x70] sm:$0xff] }
 0x69f   :  { %2462 = vmatprep.subr.bf16.mxu0 %v3064_v0  ;;  %v2491_v6 = vpack.c.bf16 %v927_v5, %v925_v4  ;;  %v2529_v4 = vpack.c.bf16 %v973_v2, %v972_v63  ;;  %v956_v5 = vld [vmem:[#allocation16 + $0x50] sm:$0xff]  ;;  %v1378_v63 = vld [vmem:[%s3569_s9 + $0x8] sm:$0xff] }
 0x6a0   :  { %v1379_v2 = vld [vmem:[%s3569_s9 + $0x10] sm:$0xff] }
 0x6a2   :  { %2464 = vmatpush3.bf16.msra.mxu0 %v2463_v8  ;;  %v932_v8 = vld [vmem:[#allocation14 + $0x98] sm:$0xff] }
 0x6a3   :  { %2465 = vmatprep.subr.bf16.mxu0 %v3064_v0  ;;  %v2493_v9 = vpack.c.bf16 %v932_v8, %v930_v7  ;;  %v974_v7 = vld [vmem:[#allocation16 + $0xe0] sm:$0xff]  ;;  %v975_v8 = vld [vmem:[#allocation16 + $0xe8] sm:$0xff] }
 0x6a6   :  { %2467 = vmatpush3.bf16.msra.mxu0 %v2466_v11  ;;  %v931_v11 = vld [vmem:[#allocation14 + $0x90] sm:$0xff] }
 0x6a7   :  { %2468 = vmatprep.subr.bf16.mxu0 %v3064_v0  ;;  %v2495_v46 = vpack.c.bf16 %v931_v11, %v929_v10  ;;  %v2533_v10 = vpack.c.bf16 %v975_v8, %v974_v7  ;;  %v1382_v7 = vld [vmem:[%s3569_s9 + $0x28] sm:$0xff] }
 0x6aa   :  { %2470 = vmatpush3.bf16.msra.mxu0 %v2469_v14  ;;  %v936_v14 = vld [vmem:[#allocation14 + $0xb8] sm:$0xff] }
 0x6ab   :  { %2471 = vmatprep.subr.bf16.mxu0 %v3064_v0  ;;  %v2497_v17 = vpack.c.bf16 %v936_v14, %v934_v12 }
 0x6ae   :  { %2473 = vmatpush3.bf16.msra.mxu0 %v2472_v18  ;;  %v935_v18 = vld [vmem:[#allocation14 + $0xb0] sm:$0xff] }
 0x6af   :  { %2474 = vmatprep.subr.bf16.mxu0 %v3064_v0 }
 0x727   :  { %v855_v39 = vpop.xlane.xlu1 %854 }
 0x728   :  { %v856_v40 = vmul.f32 0.0078125, %v855_v39 }
 0x72a   :  { %v3450_v41 = vsub.f32 %v853_v29, %v856_v40  ;;  %v911_v29 = vld [vmem:[#allocation13 + $0x78] sm:$0xff]  ;;  %v914_v40 = vld [vmem:[#allocation14 + $0x8] sm:$0xff] }
 0x72b   :  { %v2475_v30 = vpack.c.bf16 %v911_v29, %v910_v28  ;;  %v941_v29 = vld [vmem:[#allocation14 + $0xe0] sm:$0xff] }
 0x72c   :  { %v858_v42 = vmul.f32 %v3450_v41, %v3450_v41 }
 0x72d   :  { %2476 = vmatpush3.bf16.msra.mxu0 %v2475_v30  ;;  %v943_v30 = vld [vmem:[#allocation14 + $0xf0] sm:$0xff] }
 0x72e   :  { %859 = vadd.xlane.f32.xlu1 %v858_v42  ;;  %v913_v42 = vld [vmem:[#allocation14] sm:$0xff] }
 0x72f   :  { %v2479_v48 = vpack.c.bf16 %v915_v44, %v913_v42  ;;  %v949_v42 = vld [vmem:[#allocation16 + $0x18] sm:$0xff]  ;;  %v967_v44 = vld [vmem:[#allocation16 + $0xa8] sm:$0xff] }
 0x7bb   :  { %v860_v19 = vpop.xlane.xlu1 %859 }
 0x7bc   :  { %v861_v20 = vmul.f32 0.0078125, %v860_v19  ;;  %v938_v19 = vld [vmem:[#allocation14 + $0xc8] sm:$0xff] }
 0x7be   :  { %v862_v21 = vadd.f32 1e-05, %v861_v20  ;;  %v940_v20 = vld [vmem:[#allocation14 + $0xd8] sm:$0xff] }
 0x7c0   :  { %2691 = vrsqrt.f32 %v862_v21  ;;  %v2499_v21 = vpack.c.bf16 %v935_v18, %v933_v16  ;;  %v1863_v16 = vld [vmem:[%s3563_s8] ss:$0 sm:$0xff] }
 0x7c1   :  { %v1864_v18 = vld [vmem:[%s3564_s22] ss:$0 sm:$0xff] }
 0x7ca   :  { %v2692_v22 = vpop.eup %2691 }
 0x7cb   :  { %v864_v24 = vmul.f32 %v2692_v22, %v3450_v41  ;;  %v916_v41 = vld [vmem:[#allocation14 + $0x18] sm:$0xff]  ;;  %v2501_v22 = vpack.c.bf16 %v940_v20, %v938_v19 }
 0x7cc   :  { %v2477_v43 = vpack.c.bf16 %v916_v41, %v914_v40  ;;  %v948_v41 = vld [vmem:[#allocation16 + $0x10] sm:$0xff] }
 0x7cd   :  { %v871_v26 = vmul.f32 %v1859_v23, %v864_v24  ;;  %v937_v23 = vld [vmem:[#allocation14 + $0xc0] sm:$0xff]  ;;  %v939_v24 = vld [vmem:[#allocation14 + $0xd0] sm:$0xff]  ;;  %v2515_v45 = vpack.c.bf16 %v949_v42, %v948_v41 }
 0x7ce   :  { %2478 = vmatprep.subr.bf16.mxu1 %v2477_v43  ;;  %v966_v43 = vld [vmem:[#allocation16 + $0xa0] sm:$0xff] }
 0x7cf   :  { %v878_v27 = vadd.f32 %v1860_v25, %v871_v26  ;;  %v942_v25 = vld [vmem:[#allocation14 + $0xe8] sm:$0xff]  ;;  %v944_v26 = vld [vmem:[#allocation14 + $0xf8] sm:$0xff]  ;;  %v2517_v47 = vpack.c.bf16 %v967_v44, %v966_v43 }
 0x7d0   :  { %v2505_v28 = vpack.c.bf16 %v944_v26, %v942_v25  ;;  %v977_v25 = vld [vmem:[#allocation16 + $0xf8] sm:$0xff] }
 0x7d1   :  { %2221 = vmatmul.mubr.f32.vlgmr.msra.gmra.mrb[4].mxu1 %v878_v27 }
 0x7d2   :  { %1236 = vmatprep.mubr.f32.mxu1 %v3066_v1  ;;  %2480 = vmatpush1.bf16.msra.mxu1 %v2479_v48  ;;  %v950_v48 = vld [vmem:[#allocation16 + $0x20] sm:$0xff] }
 0x7d3   :  { %2482 = vmatprep.subr.bf16.mxu1 %v2481_v49  ;;  %v951_v49 = vld [vmem:[#allocation16 + $0x28] sm:$0xff] }
 0x7d4   :  { %v2519_v52 = vpack.c.bf16 %v951_v49, %v950_v48 }
 0x7d6   :  { %2484 = vmatpush1.bf16.msra.mxu1 %v2483_v54  ;;  %v952_v54 = vld [vmem:[#allocation16 + $0x30] sm:$0xff] }
 0x7d7   :  { %2486 = vmatprep.subr.bf16.mxu1 %v2485_v55  ;;  %v953_v55 = vld [vmem:[#allocation16 + $0x38] sm:$0xff] }
 0x7da   :  { %2488 = vmatpush1.bf16.msra.mxu1 %v2487_v58  ;;  %v2523_v58 = vpack.c.bf16 %v953_v55, %v952_v54  ;;  %v1867_v54 = vld [vmem:[%s3568_s0] ss:$0 sm:$0xff] }
 0x7db   :  { %2490 = vmatprep.subr.bf16.mxu1 %v2489_v3 }
 0x7de   :  { %2492 = vmatpush1.bf16.msra.mxu1 %v2491_v6  ;;  %v957_v6 = vld [vmem:[#allocation16 + $0x58] sm:$0xff] }
 0x7df   :  { %2494 = vmatprep.subr.bf16.mxu1 %v2493_v9  ;;  %v2531_v9 = vpack.c.bf16 %v957_v6, %v956_v5  ;;  %v1381_v6 = vld [vmem:[%s3569_s9 + $0x20] sm:$0xff] }
 0x7e0   :  { %v2548_v8 = vpack.c.bf16 %v1382_v7, %v1381_v6  ;;  %v1405_v6 = vld [vmem:[#allocation17 + $0x48] sm:$0xff]  ;;  %v1407_v7 = vld [vmem:[#allocation17 + $0x58] sm:$0xff] }
 0x7e2   :  { %2496 = vmatpush1.bf16.msra.mxu1 %v2495_v46 }
 0x7e3   :  { %2498 = vmatprep.subr.bf16.mxu1 %v2497_v17 }
 0x7e6   :  { %2500 = vmatpush1.bf16.msra.mxu1 %v2499_v21  ;;  %v958_v21 = vld [vmem:[#allocation16 + $0x60] sm:$0xff] }
 0x7e7   :  { %2502 = vmatprep.subr.bf16.mxu1 %v2501_v22  ;;  %v959_v22 = vld [vmem:[#allocation16 + $0x68] sm:$0xff] }
 0x8a4   :  { %v1055_v32 = vpop.f32.mrb[4].mxu1 }
 0x8a5   :  { %v1056_v33 = vadd.f32 %v1861_v31, %v1055_v32  ;;  %v2222_v34 = vpop.f32.mrb[5].mxu1  ;;  %v2507_v31 = vpack.c.bf16 %v943_v30, %v941_v29  ;;  %v962_v32 = vld [vmem:[#allocation16 + $0x80] sm:$0xff] }
 0x8a6   :  { %v946_v34 = vld [vmem:[#allocation16] sm:$0xff] }
 0x8a7   :  { %2256 = vmatmul.mubr.f32.vlgmr.msra.gmra.mrb[6].mxu0 %v1056_v33  ;;  %v963_v33 = vld [vmem:[#allocation16 + $0x88] sm:$0xff] }
 0x97a   :  { %v1131_v36 = vpop.f32.mrb[6].mxu0 }
 0x97b   :  { %v1132_v37 = vadd.f32 %v1862_v35, %v1131_v36  ;;  %v2257_v38 = vpop.f32.mrb[7].mxu0  ;;  %v2509_v35 = vpack.c.bf16 %v963_v33, %v962_v32  ;;  %v947_v36 = vld [vmem:[#allocation16 + $0x8] sm:$0xff] }
 0x97c   :  { %v965_v38 = vld [vmem:[#allocation16 + $0x98] sm:$0xff] }
 0x97d   :  { %v1135_v39 = vadd.f32 %v1132_v37, %v878_v27  ;;  %v2503_v27 = vpack.c.bf16 %v939_v24, %v937_v23  ;;  %v964_v37 = vld [vmem:[#allocation16 + $0x90] sm:$0xff]  ;;  %2510 = vmatprep.subr.bf16.mxu0 %v2509_v35  ;;  %v2535_v23 = vpack.c.bf16 %v959_v22, %v958_v21 }
 0x97e   :  { %v2513_v40 = vpack.c.bf16 %v965_v38, %v964_v37  ;;  %v976_v24 = vld [vmem:[#allocation16 + $0xf0] sm:$0xff] }
 0x97f   :  { %1136 = vadd.xlane.f32.xlu0 %v1135_v39  ;;  %2504 = vmatpush1.bf16.msra.mxu1 %v2503_v27  ;;  %v2537_v26 = vpack.c.bf16 %v977_v25, %v976_v24  ;;  %v960_v27 = vld [vmem:[#allocation16 + $0x70] sm:$0xff] }
 0x980   :  { %2506 = vmatprep.subr.bf16.mxu1 %v2505_v28  ;;  %v961_v28 = vld [vmem:[#allocation16 + $0x78] sm:$0xff]  ;;  %v1391_v22 = vld [vmem:[%s3569_s9 + $0x70] sm:$0xff] }
 0x981   :  { %v2539_v29 = vpack.c.bf16 %v961_v28, %v960_v27 }
 0x983   :  { %2508 = vmatpush1.bf16.msra.mxu1 %v2507_v31 }
 0x984   :  { %2541 = vmatprep.subr.bf16.mxu1 %v3064_v0 }
 0xa0c   :  { %v1137_v59 = vpop.xlane.xlu0 %1136 }
 0xa0d   :  { %v1138_v60 = vmul.f32 0.0078125, %v1137_v59  ;;  %v2525_v59 = vpack.c.bf16 %v971_v57, %v970_v56 }
 0xa0f   :  { %v3471_v61 = vsub.f32 %v1135_v39, %v1138_v60  ;;  %v2511_v39 = vpack.c.bf16 %v947_v36, %v946_v34  ;;  %v954_v60 = vld [vmem:[#allocation16 + $0x40] sm:$0xff] }
 0xa11   :  { %v1140_v62 = vmul.f32 %v3471_v61, %v3471_v61  ;;  %2512 = vmatpush3.bf16.msra.mxu0 %v2511_v39  ;;  %v1865_v39 = vld [vmem:[%s3566_s1] ss:$0 sm:$0xff] }
 0xa12   :  { %2514 = vmatprep.subr.bf16.mxu0 %v2513_v40 }
 0xa13   :  { %1141 = vadd.xlane.f32.xlu1 %v1140_v62  ;;  %v955_v62 = vld [vmem:[#allocation16 + $0x48] sm:$0xff] }
 0xa14   :  { %v2527_v3 = vpack.c.bf16 %v955_v62, %v954_v60  ;;  %v1377_v62 = vld [vmem:[%s3569_s9] sm:$0xff] }
 0xa15   :  { %2516 = vmatpush3.bf16.msra.mxu0 %v2515_v45 }
 0xa16   :  { %2518 = vmatprep.subr.bf16.mxu0 %v2517_v47 }
 0xa19   :  { %2520 = vmatpush3.bf16.msra.mxu0 %v2519_v52  ;;  %v1866_v52 = vld [vmem:[%s3567_s2] ss:$0 sm:$0xff] }
 0xa1a   :  { %2522 = vmatprep.subr.bf16.mxu0 %v2521_v53 }
 0xa1d   :  { %2524 = vmatpush3.bf16.msra.mxu0 %v2523_v58 }
 0xa1e   :  { %2526 = vmatprep.subr.bf16.mxu0 %v2525_v59 }
 0xa21   :  { %2528 = vmatpush3.bf16.msra.mxu0 %v2527_v3  ;;  %v2542_v3 = vpack.c.bf16 %v1378_v63, %v1377_v62  ;;  %v1401_v62 = vld [vmem:[#allocation17 + $0x28] sm:$0xff]  ;;  %v1403_v63 = vld [vmem:[#allocation17 + $0x38] sm:$0xff] }
 0xa22   :  { %2530 = vmatprep.subr.bf16.mxu0 %v2529_v4  ;;  %v1380_v4 = vld [vmem:[%s3569_s9 + $0x18] sm:$0xff] }
 0xa23   :  { %v2545_v5 = vpack.c.bf16 %v1380_v4, %v1379_v2  ;;  %v2569_v2 = vpack.c.bf16 %v1403_v63, %v1401_v62  ;;  %v1402_v4 = vld [vmem:[#allocation17 + $0x30] sm:$0xff] }
 0xa24   :  { %v1435_v63 = vld [vmem:[#allocation19 + $0x30] sm:$0xff] }
 0xa25   :  { %2532 = vmatpush3.bf16.msra.mxu0 %v2531_v9  ;;  %v1383_v9 = vld [vmem:[%s3569_s9 + $0x30] sm:$0xff] }
 0xa26   :  { %2534 = vmatprep.subr.bf16.mxu0 %v2533_v10  ;;  %v1384_v10 = vld [vmem:[%s3569_s9 + $0x38] sm:$0xff] }
 0xa29   :  { %2536 = vmatpush3.bf16.msra.mxu0 %v2535_v23  ;;  %v1392_v23 = vld [vmem:[%s3569_s9 + $0x78] sm:$0xff] }
 0xa2a   :  { %2538 = vmatprep.subr.bf16.mxu0 %v2537_v26  ;;  %v2563_v24 = vpack.c.bf16 %v1392_v23, %v1391_v22  ;;  %v1412_v22 = vld [vmem:[#allocation17 + $0x80] sm:$0xff]  ;;  %v1414_v23 = vld [vmem:[#allocation17 + $0x90] sm:$0xff] }
 0xa2d   :  { %2540 = vmatpush3.bf16.msra.mxu0 %v2539_v29  ;;  %v1868_v29 = vld [vmem:[%s3570_s3] ss:$0 sm:$0xff] }
 0xaa0   :  { %v1142_v11 = vpop.xlane.xlu1 %1141 }
 0xaa1   :  { %v1143_v46 = vmul.f32 0.0078125, %v1142_v11  ;;  %v2551_v11 = vpack.c.bf16 %v1384_v10, %v1383_v9  ;;  %v1404_v9 = vld [vmem:[#allocation17 + $0x40] sm:$0xff]  ;;  %v1406_v10 = vld [vmem:[#allocation17 + $0x50] sm:$0xff] }
 0xaa3   :  { %v1144_v12 = vadd.f32 1e-05, %v1143_v46  ;;  %v1385_v46 = vld [vmem:[%s3569_s9 + $0x40] sm:$0xff] }
 0xaa5   :  { %2693 = vrsqrt.f32 %v1144_v12  ;;  %v1386_v12 = vld [vmem:[%s3569_s9 + $0x48] sm:$0xff] }
 0xaaf   :  { %v2694_v14 = vpop.eup %2693 }
 0xab0   :  { %v1146_v17 = vmul.f32 %v2694_v14, %v3471_v61  ;;  %v945_v61 = vld [vmem:[%s3565_s17] sm:$0x3]  ;;  %v2554_v14 = vpack.c.bf16 %v1386_v12, %v1385_v46  ;;  %v1409_v46 = vld [vmem:[#allocation17 + $0x68] sm:$0xff]  ;;  %v1411_v12 = vld [vmem:[#allocation17 + $0x78] sm:$0xff] }
 0xab1   :  { %v1165_v30 = vrot.slane %v945_v61, %v3437_v13  ;;  %v1169_v31 = vrot.slane %v945_v61, %v3440_v15 }
 0xab2   :  { %v1153_v19 = vmul.f32 %v1863_v16, %v1146_v17  ;;  %v1387_v16 = vld [vmem:[%s3569_s9 + $0x50] sm:$0xff]  ;;  %v1388_v17 = vld [vmem:[%s3569_s9 + $0x58] sm:$0xff] }
 0xab4   :  { %v1160_v20 = vadd.f32 %v1864_v18, %v1153_v19  ;;  %v2557_v18 = vpack.c.bf16 %v1388_v17, %v1387_v16  ;;  %v1389_v19 = vld [vmem:[%s3569_s9 + $0x60] sm:$0xff]  ;;  %v1410_v17 = vld [vmem:[#allocation17 + $0x70] sm:$0xff] }
 0xab5   :  { %v1408_v16 = vld [vmem:[#allocation17 + $0x60] sm:$0xff] }
 0xab6   :  { %1237 = vmatmul.mubr.f32.vlgmr.msra.gmra.mrb[6].mxu1 %v1160_v20 }
 0xab7   :  { %2290 = vmatprep.mubr.msk.f32.mxu1 %vm3065_vm0, %v3066_v1  ;;  %2543 = vmatpush3.bf16.msra.mxu1 %v2542_v3  ;;  %v1400_v3 = vld [vmem:[#allocation17 + $0x20] sm:$0xff] }
 0xab8   :  { %2544 = vmatprep.subr.bf16.mxu1 %v3064_v0 }
 0xabb   :  { %2546 = vmatpush3.bf16.msra.mxu1 %v2545_v5  ;;  %v2571_v5 = vpack.c.bf16 %v1402_v4, %v1400_v3  ;;  %v1453_v3 = vld [vmem:[#allocation19 + $0xc0] sm:$0xff]  ;;  %v1454_v4 = vld [vmem:[#allocation19 + $0xc8] sm:$0xff] }
 0xabc   :  { %2547 = vmatprep.subr.bf16.mxu1 %v3064_v0 }
 0xabf   :  { %2549 = vmatpush3.bf16.msra.mxu1 %v2548_v8  ;;  %v2573_v8 = vpack.c.bf16 %v1407_v7, %v1405_v6  ;;  %v2613_v6 = vpack.c.bf16 %v1454_v4, %v1453_v3  ;;  %v1437_v7 = vld [vmem:[#allocation19 + $0x40] sm:$0xff] }
 0xac0   :  { %2550 = vmatprep.subr.bf16.mxu1 %v3064_v0 }
 0xac3   :  { %2552 = vmatpush3.bf16.msra.mxu1 %v2551_v11  ;;  %v2575_v11 = vpack.c.bf16 %v1406_v10, %v1404_v9  ;;  %v1455_v9 = vld [vmem:[#allocation19 + $0xd0] sm:$0xff]  ;;  %v1456_v10 = vld [vmem:[#allocation19 + $0xd8] sm:$0xff] }
 0xac4   :  { %2553 = vmatprep.subr.bf16.mxu1 %v3064_v0 }
 0xac7   :  { %2555 = vmatpush3.bf16.msra.mxu1 %v2554_v14  ;;  %v2577_v14 = vpack.c.bf16 %v1411_v12, %v1409_v46  ;;  %v2617_v46 = vpack.c.bf16 %v1456_v10, %v1455_v9  ;;  %v1439_v12 = vld [vmem:[#allocation19 + $0x50] sm:$0xff] }
 0xac8   :  { %2556 = vmatprep.subr.bf16.mxu1 %v3064_v0 }
 0xacb   :  { %2558 = vmatpush3.bf16.msra.mxu1 %v2557_v18  ;;  %v2579_v18 = vpack.c.bf16 %v1410_v17, %v1408_v16  ;;  %v1872_v17 = vld [vmem:[%s3574_s10] ss:$0 sm:$0xff] }
 0xacc   :  { %2559 = vmatprep.subr.bf16.mxu1 %v3064_v0 }
 0xb89   :  { %v1238_v32 = vpop.f32.mrb[6].mxu1 }
 0xb8a   :  { %v1239_v33 = vadd.f32 %v1238_v32, %v1165_v30  ;;  %v1240_v34 = vpop.f32.mrb[7].mxu1  ;;  %v1869_v30 = vld [vmem:[%s3571_s25] ss:$0 sm:$0xff] }
 0xb8b   :  { %v1241_v35 = vadd.f32 %v1240_v34, %v1169_v31 }
 0xb8c   :  { %v1243_v37 = vmax.f32 %v1239_v33, 0.0 }
 0xb8d   :  { %v1244_v36 = vmax.f32 %v1241_v35, 0.0 }
 0xb8f   :  { %1315 = vmatprep.mubr.f32.mxu0 %v1244_v36 }
 0xb90   :  { %1316 = vmatmul.mubr.f32.vlgmr.msra.gmra.mrb[8].mxu0 %v1243_v37 }
 0xb91   :  { %1683 = vmatprep.mubr.f32.mxu0 %v3066_v1 }
 0xc63   :  { %v2028_v38 = vpop.f32.mrb[8].mxu0 }
 0xc64   :  { %v2029_v40 = vpop.f32.mrb[9].mxu0 }
 0xc65   :  { %v2030_v41 = vadd.f32 %v2029_v40, %v2028_v38 }
 0xc67   :  { %v1318_v42 = vadd.f32 %v2030_v41, %v1865_v39 }
 0xc69   :  { %v1321_v43 = vadd.f32 %v1318_v42, %v1160_v20  ;;  %v1390_v20 = vld [vmem:[%s3569_s9 + $0x68] sm:$0xff] }
 0xc6a   :  { %v2560_v21 = vpack.c.bf16 %v1390_v20, %v1389_v19  ;;  %v1413_v19 = vld [vmem:[#allocation17 + $0x88] sm:$0xff]  ;;  %v1415_v20 = vld [vmem:[#allocation17 + $0x98] sm:$0xff] }
 0xc6b   :  { %1322 = vadd.xlane.f32.xlu0 %v1321_v43 }
 0xc6c   :  { %2561 = vmatpush3.bf16.msra.mxu1 %v2560_v21  ;;  %v2581_v21 = vpack.c.bf16 %v1415_v20, %v1413_v19 }
 0xc6d   :  { %2562 = vmatprep.subr.bf16.mxu1 %v3064_v0 }
 0xc70   :  { %2564 = vmatpush3.bf16.msra.mxu1 %v2563_v24  ;;  %v2583_v24 = vpack.c.bf16 %v1414_v23, %v1412_v22 }
 0xcf8   :  { %v1323_v44 = vpop.xlane.xlu0 %1322 }
 0xcf9   :  { %v1324_v45 = vmul.f32 0.0078125, %v1323_v44 }
 0xcfb   :  { %v1325_v47 = vsub.f32 %v1321_v43, %v1324_v45 }
 0xcfd   :  { %v1326_v48 = vmul.f32 %v1325_v47, %v1325_v47 }
 0xcff   :  { %1327 = vadd.xlane.f32.xlu1 %v1326_v48 }
 0xd8c   :  { %v1328_v49 = vpop.xlane.xlu1 %1327 }
 0xd8d   :  { %v1329_v50 = vmul.f32 0.0078125, %v1328_v49 }
 0xd8f   :  { %v1330_v51 = vadd.f32 1e-05, %v1329_v50 }
 0xd91   :  { %2695 = vrsqrt.f32 %v1330_v51  ;;  %v1870_v51 = vld [vmem:[%s3572_s7] ss:$0 sm:$0xff] }
 0xd9b   :  { %v2696_v1 = vpop.eup %2695 }
 0xd9c   :  { %v1332_v53 = vmul.f32 %v2696_v1, %v1325_v47 }
 0xd9e   :  { %v1339_v55 = vmul.f32 %v1866_v52, %v1332_v53  ;;  %v1871_v52 = vld [vmem:[%s3573_s20] ss:$0 sm:$0xff] }
 0xda0   :  { %v1346_v56 = vadd.f32 %v1867_v54, %v1339_v55  ;;  %v1397_v55 = vld [vmem:[#allocation17 + $0x8] sm:$0xff] }
 0xda2   :  { %1349 = vadd.xlane.f32.xlu0 %v1346_v56 }
 0xe2f   :  { %v1350_v57 = vpop.xlane.xlu0 %1349 }
 0xe30   :  { %v1351_v58 = vmul.f32 0.0078125, %v1350_v57 }
 0xe32   :  { %v1352_v59 = vsub.f32 %v1346_v56, %v1351_v58  ;;  %v1399_v56 = vld [vmem:[#allocation17 + $0x18] sm:$0xff]  ;;  %v1396_v58 = vld [vmem:[#allocation17] sm:$0xff] }
 0xe33   :  { %v2565_v57 = vpack.c.bf16 %v1399_v56, %v1397_v55  ;;  %v1433_v56 = vld [vmem:[#allocation19 + $0x20] sm:$0xff] }
 0xe34   :  { %v1353_v60 = vmul.f32 %v1352_v59, %v1352_v59 }
 0xe35   :  { %2566 = vmatprep.subr.bf16.mxu0 %v2565_v57  ;;  %v1434_v57 = vld [vmem:[#allocation19 + $0x28] sm:$0xff] }
 0xe36   :  { %1354 = vadd.xlane.f32.xlu1 %v1353_v60 }
 0xec3   :  { %v1355_v25 = vpop.xlane.xlu1 %1354 }
 0xec4   :  { %v1356_v26 = vmul.f32 0.0078125, %v1355_v25  ;;  %v1417_v25 = vld [vmem:[#allocation17 + $0xa8] sm:$0xff] }
 0xec6   :  { %v1357_v27 = vadd.f32 1e-05, %v1356_v26  ;;  %v1419_v26 = vld [vmem:[#allocation17 + $0xb8] sm:$0xff] }
 0xec8   :  { %2697 = vrsqrt.f32 %v1357_v27  ;;  %v2585_v27 = vpack.c.bf16 %v1419_v26, %v1417_v25 }
 0xed2   :  { %v2698_v28 = vpop.eup %2697 }
 0xed3   :  { %v1359_v61 = vmul.f32 %v2698_v28, %v1352_v59  ;;  %v1398_v59 = vld [vmem:[#allocation17 + $0x10] sm:$0xff]  ;;  %v1416_v28 = vld [vmem:[#allocation17 + $0xa0] sm:$0xff] }
 0xed4   :  { %v2567_v60 = vpack.c.bf16 %v1398_v59, %v1396_v58  ;;  %v1451_v58 = vld [vmem:[#allocation19 + $0xb0] sm:$0xff]  ;;  %v1452_v59 = vld [vmem:[#allocation19 + $0xb8] sm:$0xff] }
 0xed5   :  { %v1366_v31 = vmul.f32 %v1868_v29, %v1359_v61  ;;  %v1418_v29 = vld [vmem:[#allocation17 + $0xb0] sm:$0xff]  ;;  %v2609_v62 = vpack.c.bf16 %v1452_v59, %v1451_v58 }
 0xed6   :  { %2568 = vmatpush1.bf16.msra.mxu0 %v2567_v60  ;;  %v2587_v61 = vpack.c.bf16 %v1418_v29, %v1416_v28  ;;  %v2607_v60 = vpack.c.bf16 %v1434_v57, %v1433_v56  ;;  %v1428_v56 = vld [vmem:[%s3577_s14] sm:$0x3] }
 0xed7   :  { %v1373_v32 = vadd.f32 %v1869_v30, %v1366_v31  ;;  %2570 = vmatprep.subr.bf16.mxu0 %v2569_v2  ;;  %v1421_v30 = vld [vmem:[#allocation17 + $0xc8] sm:$0xff]  ;;  %v1423_v31 = vld [vmem:[#allocation17 + $0xd8] sm:$0xff]  ;;  %v1612_v57 = vrot.slane %v1428_v56, %v3437_v13  ;;  %v1616_v58 = vrot.slane %v1428_v56, %v3440_v15 }
 0xed8   :  { %v1436_v2 = vld [vmem:[#allocation19 + $0x38] sm:$0xff] }
 0xed9   :  { %1374 = vst [vmem:[#allocation21] sm:$0xff] %v1373_v32  ;;  %v1462_v33 = vrot.slane %v1373_v32, 4 }
 0xeda   :  { %2572 = vmatpush1.bf16.msra.mxu0 %v2571_v5  ;;  %v2611_v5 = vpack.c.bf16 %v1436_v2, %v1435_v63 }
 0xedb   :  { %v1463_v34 = vadd.f32 %v1462_v33, %v1373_v32  ;;  %2574 = vmatprep.subr.bf16.mxu0 %v2573_v8  ;;  %v1420_v33 = vld [vmem:[#allocation17 + $0xc0] sm:$0xff]  ;;  %v1438_v8 = vld [vmem:[#allocation19 + $0x48] sm:$0xff] }
 0xedd   :  { %v1464_v35 = vrot.slane %v1463_v34, 2 }
 0xede   :  { %2576 = vmatpush1.bf16.msra.mxu0 %v2575_v11  ;;  %v2615_v11 = vpack.c.bf16 %v1438_v8, %v1437_v7 }
 0xedf   :  { %v1465_v36 = vadd.f32 %v1464_v35, %v1463_v34  ;;  %2578 = vmatprep.subr.bf16.mxu0 %v2577_v14  ;;  %v1422_v34 = vld [vmem:[#allocation17 + $0xd0] sm:$0xff]  ;;  %v1440_v14 = vld [vmem:[#allocation19 + $0x58] sm:$0xff] }
 0xee0   :  { %v2591_v35 = vpack.c.bf16 %v1422_v34, %v1420_v33  ;;  %v2619_v16 = vpack.c.bf16 %v1440_v14, %v1439_v12 }
 0xee1   :  { %v1466_v37 = vrot.slane %v1465_v36, 1 }
 0xee2   :  { %2580 = vmatpush1.bf16.msra.mxu0 %v2579_v18 }
 0xee3   :  { %v1467_v38 = vadd.f32 %v1466_v37, %v1465_v36  ;;  %2582 = vmatprep.subr.bf16.mxu0 %v2581_v21  ;;  %v1425_v36 = vld [vmem:[#allocation17 + $0xe8] sm:$0xff]  ;;  %v1427_v37 = vld [vmem:[#allocation17 + $0xf8] sm:$0xff] }
 0xee5   :  { %v1469_v0 = vmul.f32 0.125, %v1467_v38  ;;  %v2593_v38 = vpack.c.bf16 %v1427_v37, %v1425_v36 }
 0xee6   :  { %2584 = vmatpush1.bf16.msra.mxu0 %v2583_v24 }
 0xee7   :  { %v1470_v39 = vsub.f32 %v1373_v32, %v1469_v0  ;;  %2586 = vmatprep.subr.bf16.mxu0 %v2585_v27  ;;  %v2589_v32 = vpack.c.bf16 %v1423_v31, %v1421_v30  ;;  %v1424_v0 = vld [vmem:[#allocation17 + $0xe0] sm:$0xff] }
 0xee9   :  { %v1471_v40 = vmul.f32 %v1470_v39, %v1470_v39 }
 0xeea   :  { %2588 = vmatpush1.bf16.msra.mxu0 %v2587_v61 }
 0xeeb   :  { %v1472_v41 = vrot.slane %v1471_v40, 4  ;;  %2590 = vmatprep.subr.bf16.mxu0 %v2589_v32 }
 0xeed   :  { %v1473_v42 = vadd.f32 %v1472_v41, %v1471_v40  ;;  %v1445_v41 = vld [vmem:[#allocation19 + $0x80] sm:$0xff] }
 0xeee   :  { %2592 = vmatpush1.bf16.msra.mxu0 %v2591_v35 }
 0xeef   :  { %v1474_v43 = vrot.slane %v1473_v42, 2  ;;  %2594 = vmatprep.subr.bf16.mxu0 %v2593_v38 }
 0xef1   :  { %v1475_v44 = vadd.f32 %v1474_v43, %v1473_v42  ;;  %v1446_v42 = vld [vmem:[#allocation19 + $0x88] sm:$0xff]  ;;  %v1429_v43 = vld [vmem:[#allocation19] sm:$0xff] }
 0xef3   :  { %v1476_v45 = vrot.slane %v1475_v44, 1 }
 0xef5   :  { %v1477_v47 = vadd.f32 %v1476_v45, %v1475_v44  ;;  %v2597_v44 = vpack.c.bf16 %v1446_v42, %v1445_v41  ;;  %v1430_v45 = vld [vmem:[#allocation19 + $0x8] sm:$0xff]  ;;  %v1874_v41 = vld [vmem:[%s3576_s18] ss:$0 sm:$0xff] }
 0xef7   :  { %v1478_v48 = vmul.f32 0.125, %v1477_v47  ;;  %v1447_v47 = vld [vmem:[#allocation19 + $0x90] sm:$0xff]  ;;  %2598 = vmatprep.subr.bf16.mxu1 %v2597_v44  ;;  %v1457_v44 = vld [vmem:[#allocation19 + $0xe0] sm:$0xff] }
 0xef9   :  { %v1479_v49 = vadd.f32 1e-05, %v1478_v48  ;;  %v1448_v48 = vld [vmem:[#allocation19 + $0x98] sm:$0xff] }
 0xefb   :  { %2699 = vrsqrt.f32 %v1479_v49  ;;  %v2599_v49 = vpack.c.bf16 %v1430_v45, %v1429_v43  ;;  %v1458_v45 = vld [vmem:[#allocation19 + $0xe8] sm:$0xff] }
 0xf05   :  { %v2700_v50 = vpop.eup %2699 }
 0xf06   :  { %v1481_v1 = vmul.f32 %v2700_v50, %v1470_v39  ;;  %v1426_v39 = vld [vmem:[#allocation17 + $0xf0] sm:$0xff]  ;;  %v2601_v50 = vpack.c.bf16 %v1448_v48, %v1447_v47  ;;  %v2621_v47 = vpack.c.bf16 %v1458_v45, %v1457_v44  ;;  %v1441_v48 = vld [vmem:[#allocation19 + $0x60] sm:$0xff] }
 0xf07   :  { %v2595_v40 = vpack.c.bf16 %v1426_v39, %v1424_v0  ;;  %v1873_v39 = vld [vmem:[%s3575_s16] ss:$0 sm:$0xff] }
 0xf08   :  { %v1488_v53 = vmul.f32 %v1870_v51, %v1481_v1  ;;  %v1431_v51 = vld [vmem:[#allocation19 + $0x10] sm:$0xff]  ;;  %v1432_v1 = vld [vmem:[#allocation19 + $0x18] sm:$0xff] }
 0xf09   :  { %2596 = vmatpush1.bf16.msra.mxu0 %v2595_v40 }
 0xf0a   :  { %v1495_v54 = vadd.f32 %v1871_v52, %v1488_v53  ;;  %v1449_v52 = vld [vmem:[#allocation19 + $0xa0] sm:$0xff]  ;;  %v1450_v53 = vld [vmem:[#allocation19 + $0xa8] sm:$0xff] }
 0xf0b   :  { %v2605_v55 = vpack.c.bf16 %v1450_v53, %v1449_v52  ;;  %v1443_v53 = vld [vmem:[#allocation19 + $0x70] sm:$0xff] }
 0xf0c   :  { %2291 = vmatmul.mubr.f32.vlgmr.msra.gmra.mrb[8].mxu1 %v1495_v54  ;;  %v2603_v54 = vpack.c.bf16 %v1432_v1, %v1431_v51  ;;  %v1459_v51 = vld [vmem:[#allocation19 + $0xf0] sm:$0xff]  ;;  %v1460_v1 = vld [vmem:[#allocation19 + $0xf8] sm:$0xff] }
 0xf0d   :  { %2600 = vmatpush3.bf16.msra.mxu1 %v2599_v49  ;;  %v1442_v49 = vld [vmem:[#allocation19 + $0x68] sm:$0xff]  ;;  %v2625_v52 = vpack.c.bf16 %v1460_v1, %v1459_v51 }
 0xf0e   :  { %2602 = vmatprep.subr.bf16.mxu1 %v2601_v50  ;;  %v2623_v50 = vpack.c.bf16 %v1442_v49, %v1441_v48 }
 0xf11   :  { %2604 = vmatpush3.bf16.msra.mxu1 %v2603_v54  ;;  %v1444_v54 = vld [vmem:[#allocation19 + $0x78] sm:$0xff] }
 0xf12   :  { %2606 = vmatprep.subr.bf16.mxu1 %v2605_v55  ;;  %v2627_v55 = vpack.c.bf16 %v1444_v54, %v1443_v53 }
 0xf15   :  { %2608 = vmatpush3.bf16.msra.mxu1 %v2607_v60 }
 0xf16   :  { %2610 = vmatprep.subr.bf16.mxu1 %v2609_v62 }
 0xf19   :  { %2612 = vmatpush3.bf16.msra.mxu1 %v2611_v5 }
 0xf1a   :  { %2614 = vmatprep.subr.bf16.mxu1 %v2613_v6 }
 0xf1d   :  { %2616 = vmatpush3.bf16.msra.mxu1 %v2615_v11 }
 0xf1e   :  { %2618 = vmatprep.subr.bf16.mxu1 %v2617_v46 }
 0xf21   :  { %2620 = vmatpush3.bf16.msra.mxu1 %v2619_v16 }
 0xf22   :  { %2622 = vmatprep.subr.bf16.mxu1 %v2621_v47 }
 0xf25   :  { %2624 = vmatpush3.bf16.msra.mxu1 %v2623_v50 }
 0xf26   :  { %2626 = vmatprep.subr.bf16.mxu1 %v2625_v52 }
 0xf29   :  { %2628 = vmatpush3.bf16.msra.mxu1 %v2627_v55 }
 0xfdf   :  { %v1568_v18 = vpop.f32.mrb[8].mxu1 }
 0xfe0   :  { %v1569_v19 = vadd.f32 %v1872_v17, %v1568_v18  ;;  %v2292_v20 = vpop.f32.mrb[9].mxu1 }
 0xfe2   :  { %vm1572_vm1 = vcmp.gt.f32.partialorder %v1569_v19, 0.0  ;;  %v1573_v21 = vmul.f32 0.2, %v1569_v19 }
 0xfe4   :  { %v1574_v22 = vsel %vm1572_vm1, %v1569_v19, %v1573_v21 }
 0xfe5   :  { %v1575_v23 = vrot.slane %v1574_v22, 4 }
 0xfe7   :  { %v1576_v24 = vadd.f32 %v1575_v23, %v1574_v22 }
 0xfe9   :  { %v1577_v25 = vrot.slane %v1576_v24, 2 }
 0xfeb   :  { %v1578_v26 = vadd.f32 %v1577_v25, %v1576_v24 }
 0xfed   :  { %v1579_v27 = vrot.slane %v1578_v26, 1 }
 0xfef   :  { %v1580_v28 = vadd.f32 %v1579_v27, %v1578_v26 }
 0xff1   :  { %v1581_v29 = vmul.f32 0.125, %v1580_v28 }
 0xff3   :  { %v1582_v61 = vsub.f32 %v1574_v22, %v1581_v29 }
 0xff5   :  { %v1583_v30 = vmul.f32 %v1582_v61, %v1582_v61 }
 0xff7   :  { %v1584_v31 = vrot.slane %v1583_v30, 4 }
 0xff9   :  { %v1585_v32 = vadd.f32 %v1584_v31, %v1583_v30 }
 0xffb   :  { %v1586_v33 = vrot.slane %v1585_v32, 2 }
 0xffd   :  { %v1587_v34 = vadd.f32 %v1586_v33, %v1585_v32 }
 0xfff   :  { %v1588_v35 = vrot.slane %v1587_v34, 1 }
0x1001   :  { %v1589_v36 = vadd.f32 %v1588_v35, %v1587_v34 }
0x1003   :  { %v1590_v37 = vmul.f32 0.125, %v1589_v36 }
0x1005   :  { %v1591_v38 = vadd.f32 1e-05, %v1590_v37 }
0x1007   :  { %2701 = vrsqrt.f32 %v1591_v38 }
0x1011   :  { %v2702_v0 = vpop.eup %2701 }
0x1012   :  { %v1593_v40 = vmul.f32 %v2702_v0, %v1582_v61 }
0x1014   :  { %v1600_v42 = vmul.f32 %v1873_v39, %v1593_v40 }
0x1016   :  { %v1607_v43 = vadd.f32 %v1874_v41, %v1600_v42 }
0x1018   :  { %1684 = vmatmul.mubr.f32.vlgmr.msra.gmra.mrb[10].mxu0 %v1607_v43 }
0x10eb   :  { %v1685_v59 = vpop.f32.mrb[10].mxu0 }
0x10ec   :  { %v1686_v60 = vadd.f32 %v1685_v59, %v1612_v57  ;;  %v1687_v62 = vpop.f32.mrb[11].mxu0 }
0x10ed   :  { %v1688_v63 = vadd.f32 %v1687_v62, %v1616_v58 }
0x10ee   :  { %v1692_v2 = vmul.f32 0.2, %v1686_v60  ;;  %vm1690_vm2 = vcmp.gt.f32.partialorder %v1686_v60, 0.0 }
0x10ef   :  { %v1693_v3 = vmul.f32 0.2, %v1688_v63  ;;  %vm1691_vm3 = vcmp.gt.f32.partialorder %v1688_v63, 0.0 }
0x10f0   :  { %v1694_v5 = vsel %vm1690_vm2, %v1686_v60, %v1692_v2 }
0x10f1   :  { %v1695_v4 = vsel %vm1691_vm3, %v1688_v63, %v1693_v3 }
0x10f2   :  { %1766 = vmatprep.mubr.f32.mxu1 %v1695_v4 }
0x10f3   :  { %1767 = vmatmul.mubr.f32.vlgmr.msra.gmra.mrb[10].mxu1 %v1694_v5 }
0x10f4   :  { %2960 = shalt.err (!%p2957_p8)
}
0x10f5   :  { %s2961_s6 = scalar_lea.hbm %s3277_s27, 128 }
0x10f6   :  { %p2962_p9 = scmp.ne.s32.totalorder %s3277_s27, %s2961_s6  ;;  %p2965_p10 = scmp.lt.u32.totalorder %s2961_s6, %s3277_s27 }
0x10f8   :  { %p2967_p11 = pnand %p2965_p10, %p2962_p9 }
0x10fa   :  { %2970 = shalt.err (!%p2967_p11)
}
0x10fb   :  { %1798 = dma.vmem_to_hbm [thread:$0]  %s1796_s4, 128, %s3277_s27, [#allocation22]   ;;  %v1875_v15 = vld [vmem:[%s3267_s12] ss:$0 sm:$0xff] }
0x10fc   :  { %s3068_s28 = smov [#allocation20]  }
0x10fd   :  { %s1785_s5 = sshll.u32 %s3068_s28, 4  ;;  %s1786_s5 = int_to_ptr.vmem [resolvable:$true] %s1785_s5 }
0x10fe   :  { %s2971_s13 = scalar_lea.vmem %s1786_s5, 128  ;;  %p2976_p13 = scmp.lt.s32.totalorder %s1786_s5, %s1786_s5 }
0x10ff   :  { %p2972_p12 = scmp.ne.s32.totalorder %s1786_s5, %s2971_s13  ;;  %p2977_p0 = scmp.lt.s32.totalorder %s2971_s13, %s2971_s13 }
0x1101   :  { %p2978_p1 = por %p2977_p0, %p2976_p13 }
0x1103   :  { %p2979_p2 = pnand %p2978_p1, %p2972_p12 }
0x11c6   :  { %v2080_v13 = vpop.f32.mrb[10].mxu1 }
0x11c7   :  { %v2081_v6 = vpop.f32.mrb[11].mxu1 }
0x11c8   :  { %v2082_v7 = vadd.f32 %v2081_v6, %v2080_v13 }
0x11ca   :  { %v1769_v8 = vadd.f32 %v2082_v7, %v1875_v15 }
0x11cc   :  { %v1772_v9 = vsub.f32 0.0, %v1769_v8 }
0x11ce   :  { %v1773_v10 = vmul.f32 1.442695, %v1772_v9 }
0x11d0   :  { %2703 = vpow2.f32 %v1773_v10 }
0x11da   :  { %v2704_v11 = vpop.eup %2703 }
0x11db   :  { %v1775_v46 = vadd.f32 1.0, %v2704_v11 }
0x11dd   :  { %2705 = vrcp.f32 %v1775_v46 }
0x11e7   :  { %v2706_v12 = vpop.eup %2705 }
0x11e8   :  { %1778 = vst [vmem:[#allocation20] sm:$0xff] %v2706_v12 }
0x11e9   :  { %2982 = shalt.err (!%p2979_p2)
}
0x11ea   :  { %s2983_s12 = scalar_lea.hbm %s3272_s24, 128 }
0x11eb   :  { %p2984_p3 = scmp.ne.s32.totalorder %s3272_s24, %s2983_s12  ;;  %p2987_p4 = scmp.lt.u32.totalorder %s2983_s12, %s3272_s24 }
0x11ed   :  { %p2989_p5 = pnand %p2987_p4, %p2984_p3 }
0x11ef   :  { %2992 = shalt.err (!%p2989_p5)
}
0x11f0   :  { %1788 = dma.vmem_to_hbm [thread:$0]  %s1786_s5, 128, %s3272_s24, [#allocation4]  }
0x11f1   :  { %3005 = dma.done.wait [#allocation4], 128  }
0x11f2   :  { %3006 = vsyncadd [#allocation4], 4294967168 }
0x11f3   :  { %3007 = dma.done.wait [#allocation22], 128  }
0x11f4   :  { %3008 = vsyncadd [#allocation22], 4294967168 }
0x11f5   :  { %1805 = vsyncpa [#allocation3], 1 }
0x11f6   :  { %1806 = vsyncpa [#allocation6], 1 }
0x11f7   :  { %1807 = vsyncpa [#allocation9], 1 }
0x11f8   :  { %1808 = vsyncpa [#allocation12], 1 }
0x11f9   :  { %1809 = vsyncpa [#allocation15], 1 }
0x11fa   :  { %1810 = vsyncpa [#allocation18], 1 }
0x11fb   :  { %1811 = vsyncpa [#allocation4], 1 }
0x11fc   :  { %1812 = vsyncpa [#allocation22], 1 }

</bundles_post_ra>
